<compile_context>
chip_gen: v5e
topology: v5e:2x2
jax: 0.10.0
libtpu: 0.0.40
codegen_flags: <defaults>
</compile_context>

<pallas_src>
import functools

import jax
import jax.numpy as jnp
from jax.experimental import pallas as pl
from jax.experimental.pallas import tpu as pltpu


def _round_up(x, m):
    return (x + m - 1) // m * m


def _pick_time_chunk(T, target):
    """Largest chunk <= target that divides T (time-major: any divisor works)."""
    if T <= target:
        return T
    for ts in range(min(target, T), 0, -1):
        if T % ts == 0:
            return ts
    return 1


def _pick_row_tile(M, target):
    """Largest row tile <= target that divides M and is sublane-aligned."""
    if M <= target:
        return M
    for tm in range(min(target, M), 7, -1):
        if M % tm == 0 and tm % 8 == 0:
            return tm
    return M  # fall back: single block (M equals the full dim)


# ---------------------------------------------------------------------------
# Kernels 1 & 3: row-gridded (tm, K) @ (K, N) + bias.  Used for the hoisted
# input projection over all time steps and for the fc layer, so neither
# matmul sits on the sequential path.  Rows are pipelined (double-buffered)
# and the grid axis is "parallel" so v7x can shard it across TensorCores.
# ---------------------------------------------------------------------------
def _matmul_bias_kernel(x_ref, w_ref, b_ref, o_ref):
    o_ref[...] = (
        jnp.dot(x_ref[...], w_ref[...], preferred_element_type=jnp.float32)
        + b_ref[...]
    ).astype(o_ref.dtype)


def _matmul_bias(x, w, b, out_dtype, *, tm_target=512):
    M, K = x.shape
    N = w.shape[1]
    tm = _pick_row_tile(M, tm_target)

    est = (2 * tm * K * jnp.dtype(x.dtype).itemsize
           + 2 * K * N * jnp.dtype(w.dtype).itemsize
           + 2 * N * 4
           + 2 * tm * N * jnp.dtype(out_dtype).itemsize)
    vmem_limit = int(min(max(32 * 2**20, 2 * est), 96 * 2**20))

    return pl.pallas_call(
        _matmul_bias_kernel,
        out_shape=jax.ShapeDtypeStruct((M, N), out_dtype),
        grid_spec=pltpu.PrefetchScalarGridSpec(
            num_scalar_prefetch=0,
            grid=(M // tm,),
            in_specs=[
                pl.BlockSpec((tm, K), lambda i: (i, 0)),
                pl.BlockSpec((K, N), lambda i: (0, 0)),
                pl.BlockSpec((1, N), lambda i: (0, 0)),
            ],
            out_specs=pl.BlockSpec((tm, N), lambda i: (i, 0)),
        ),
        compiler_params=pltpu.CompilerParams(
            dimension_semantics=("parallel",),
            vmem_limit_bytes=vmem_limit,
        ),
    )(x, w, b)


# ---------------------------------------------------------------------------
# Kernel 2: the GRU recurrence (time-major).
#   gi_ref  : (TS, BB, 3*H_pad)  precomputed input projections (time chunk)
#   h0_ref  : (BB, H_pad)        initial hidden state (batch block)
#   whh_ref : (H_pad, 3*H_pad)   W_hh^T, gate-padded
#   bhhn_ref: (1, H_pad)         b_hh, n-gate slice only (r/z folded into gi)
#   hs_ref  : (TS, BB, H_pad)    per-step hidden outputs (time chunk)
#   hfin_ref: (BB, H_pad)        recurrent carry / final hidden (resident)
# ---------------------------------------------------------------------------
def _sigmoid_via_tanh(x):
    # sigmoid(x) == 0.5*(1 + tanh(x/2)): one EUP op instead of exp + divide;
    # the extra mul/add land in VALU slots, which have slack in this kernel.
    return 0.5 * (jnp.tanh(0.5 * x) + 1.0)


def _gru_chunk_kernel(gi_ref, h0_ref, whh_ref, bhhn_ref, hs_ref, hfin_ref):
    t = pl.program_id(1)           # time-chunk axis (sequential)
    ts = gi_ref.shape[0]
    bb = gi_ref.shape[1]
    hp = hfin_ref.shape[-1]

    @pl.when(t == 0)
    def _():
        hfin_ref[...] = h0_ref[...]

    # Carry lives in the resident output block across time chunks and in vregs
    # within a chunk: exactly one (BB, H_pad) read + write per chunk.
    h = hfin_ref[...]

    # Hoist the n-gate recurrent bias broadcast out of the unrolled loop
    # (JAX does not CSE broadcast_in_dim).
    bhh_n = jnp.broadcast_to(bhhn_ref[...], (bb, hp))

    # Fully unrolled (ts is a small compile-time constant): straight-line code
    # for the scheduler.  Time-major layout => gi_ref[s] / hs_ref[s] are plain
    # (sublane=BB, lane) tile loads/stores — no per-step sublane relayouts.
    for s in range(ts):
        gi = gi_ref[s].astype(jnp.float32)                       # (BB, 3*H_pad)
        gh = jnp.dot(h.astype(whh_ref.dtype), whh_ref[...],
                     preferred_element_type=jnp.float32)         # (BB, 3*H_pad)
        # Gate slices land exactly on 128-lane boundaries (H_pad % 128 == 0).
        # gi already carries b_ih + b_hh for the r/z gates (folded in wrapper).
        r = _sigmoid_via_tanh(gi[:, 0 * hp:1 * hp] + gh[:, 0 * hp:1 * hp])
        z = _sigmoid_via_tanh(gi[:, 1 * hp:2 * hp] + gh[:, 1 * hp:2 * hp])
        n = jnp.tanh(gi[:, 2 * hp:3 * hp] + r * (gh[:, 2 * hp:3 * hp] + bhh_n))
        h = (1.0 - z) * n + z * h
        hs_ref[s] = h.astype(hs_ref.dtype)                       # lane-dense store

    hfin_ref[...] = h


def conditional_decoder_forward(x, hidden, condition, params, *,
                                matmul_dtype=jnp.bfloat16, time_chunk=16):
    """Pallas implementation of ConditionalDecoder.forward.

    x: (B, T, input_dim), hidden: (1, B, hidden_dim), condition: (B, T, hidden_dim)
    returns (output (B, T, input_dim), hidden (1, B, hidden_dim))

    matmul_dtype: dtype of matmul operands and the gi/hs HBM intermediates
    (accumulation and gate math stay f32).  bf16 (default) uses the MXU at
    full rate and halves gi/hs bandwidth; float32 gives exact parity with the
    f32 reference.
    """
    B, T, I = x.shape
    H = hidden.shape[-1]
    D = I + H
    f32 = jnp.float32
    md = jnp.dtype(matmul_dtype)

    B_pad = _round_up(B, 8)      # sublane alignment
    H_pad = _round_up(H, 128)    # lane alignment (gates on 128-lane boundaries)
    I_pad = _round_up(I, 128)    # lane-dense fc output (unmasked stores)
    G = 3 * H_pad
    TS = _pick_time_chunk(T, time_chunk)
    n_chunks = T // TS

    # Batch-block "parallel" axis: shards the recurrence across the two
    # TensorCores on v7x when B_pad >= 16; single block otherwise (v5e/v6e).
    BB = B_pad // 2 if (B_pad >= 16 and B_pad % 16 == 0) else B_pad
    nb = B_pad // BB

    # ---- pad + pre-transpose weights (zero padding keeps padded lanes at 0)
    w_ih = params["weight_ih"].astype(f32)   # (3H, D)
    w_hh = params["weight_hh"].astype(f32)   # (3H, H)
    b_ih = params["bias_ih"].astype(f32)     # (3H,)
    b_hh = params["bias_hh"].astype(f32)     # (3H,)

    w_ih_p = jnp.zeros((D, G), f32)
    w_hh_p = jnp.zeros((H_pad, G), f32)
    b_gi_p = jnp.zeros((1, G), f32)          # hoisted bias for kernel 1
    for g in range(3):
        src = slice(g * H, (g + 1) * H)
        dst = slice(g * H_pad, g * H_pad + H)
        w_ih_p = w_ih_p.at[:, dst].set(w_ih[src, :].T)
        w_hh_p = w_hh_p.at[:H, dst].set(w_hh[src, :].T)
        # Fold b_hh for the r/z gates into the hoisted bias; the n-gate b_hh
        # must stay inside r * (W_hn h + b_hn) in the recurrence.
        b_gi_p = b_gi_p.at[:, dst].set(b_ih[src] + (b_hh[src] if g < 2 else 0.0))
    b_hh_n_p = jnp.zeros((1, H_pad), f32).at[:, :H].set(b_hh[2 * H:3 * H])

    w_fc_p = jnp.zeros((H_pad, I_pad), f32).at[:H, :I].set(
        params["fc_weight"].astype(f32).T)
    b_fc_p = jnp.zeros((1, I_pad), f32).at[:, :I].set(params["fc_bias"].astype(f32))

    # ---- activations: time-major internal layout
    xc = jnp.concatenate([x, condition], axis=2).astype(f32)        # (B, T, D)
    xc_tm = jnp.transpose(xc, (1, 0, 2))                            # (T, B, D)
    xc_p = jnp.zeros((T, B_pad, D), f32).at[:, :B, :].set(xc_tm)
    h0_p = jnp.zeros((B_pad, H_pad), f32).at[:B, :H].set(hidden[0].astype(f32))

    # ---- 1) hoisted input projection for ALL time steps (off the serial path)
    gi = _matmul_bias(
        xc_p.reshape(T * B_pad, D).astype(md), w_ih_p.astype(md), b_gi_p,
        out_dtype=md,
    ).reshape(T, B_pad, G)

    # ---- 2) sequential GRU recurrence over time chunks
    md_b = md.itemsize
    est = (2 * TS * BB * G * md_b + 2 * TS * BB * H_pad * md_b
           + 2 * H_pad * G * md_b + 4 * BB * H_pad * 4 + 2 * H_pad * 4)
    vmem_limit = int(min(max(32 * 2**20, 2 * est), 96 * 2**20))

    # TODO(synk): on v7x with large H, single-buffer the constant-index blocks
    # (W_hh^T, b_hh, h0) via pipeline_mode=pl.Buffered(1); an explicit
    # matmul_push_rhs/acc_lhs/pop schedule could also keep W_hh^T resident in
    # the MXU weight registers across the unrolled chunk.
    hs, h_fin = pl.pallas_call(
        _gru_chunk_kernel,
        out_shape=(
            jax.ShapeDtypeStruct((T, B_pad, H_pad), md),
            jax.ShapeDtypeStruct((B_pad, H_pad), f32),
        ),
        grid_spec=pltpu.PrefetchScalarGridSpec(
            num_scalar_prefetch=0,
            grid=(nb, n_chunks),
            in_specs=[
                pl.BlockSpec((TS, BB, G), lambda b, t: (t, b, 0)),      # gi chunk
                pl.BlockSpec((BB, H_pad), lambda b, t: (b, 0)),         # h0
                pl.BlockSpec((H_pad, G), lambda b, t: (0, 0)),          # W_hh^T
                pl.BlockSpec((1, H_pad), lambda b, t: (0, 0)),          # b_hh (n)
            ],
            out_specs=[
                pl.BlockSpec((TS, BB, H_pad), lambda b, t: (t, b, 0)),  # h_t slab
                pl.BlockSpec((BB, H_pad), lambda b, t: (b, 0)),         # carry
            ],
        ),
        compiler_params=pltpu.CompilerParams(
            dimension_semantics=("parallel", "arbitrary"),
            vmem_limit_bytes=vmem_limit,
        ),
    )(gi, h0_p, w_hh_p.astype(md), b_hh_n_p)

    # ---- 3) fc applied once to the whole hidden slab (lane-padded output)
    out_tm = _matmul_bias(
        hs.reshape(T * B_pad, H_pad), w_fc_p.astype(md), b_fc_p,
        out_dtype=f32,
    ).reshape(T, B_pad, I_pad)

    out = jnp.transpose(out_tm, (1, 0, 2))[:B, :, :I]
    return out, h_fin[:B, :H][None, ...]


def _reference_forward(x, hidden, condition, params):
    """Pure-JAX reference (mirrors torch.nn.GRU + Linear) for validation."""
    H = hidden.shape[-1]
    xc = jnp.concatenate([x, condition], axis=2)  # (B, T, D)
    w_ih, w_hh = params["weight_ih"], params["weight_hh"]
    b_ih, b_hh = params["bias_ih"], params["bias_hh"]

    def step(h, x_t):
        gi = x_t @ w_ih.T + b_ih
        gh = h @ w_hh.T + b_hh
        r = jax.nn.sigmoid(gi[:, :H] + gh[:, :H])
        z = jax.nn.sigmoid(gi[:, H:2 * H] + gh[:, H:2 * H])
        n = jnp.tanh(gi[:, 2 * H:] + r * gh[:, 2 * H:])
        h_new = (1.0 - z) * n + z * h
        return h_new, h_new

    h_fin, hs = jax.lax.scan(step, hidden[0], jnp.transpose(xc, (1, 0, 2)))
    outs = jnp.transpose(hs, (1, 0, 2))  # (B, T, H)
    out = outs @ params["fc_weight"].T + params["fc_bias"]
    return out, h_fin[None, ...]


def _init_params(key, input_dim, hidden_dim):
    """Deterministic PyTorch-style init: U(-1/sqrt(H), 1/sqrt(H))."""
    D = input_dim + hidden_dim
    k = 1.0 / jnp.sqrt(jnp.float32(hidden_dim))
    keys = jax.random.split(key, 6)
    u = lambda kk, shape: jax.random.uniform(kk, shape, jnp.float32, -k, k)
    return {
        "weight_ih": u(keys[0], (3 * hidden_dim, D)),
        "weight_hh": u(keys[1], (3 * hidden_dim, hidden_dim)),
        "bias_ih": u(keys[2], (3 * hidden_dim,)),
        "bias_hh": u(keys[3], (3 * hidden_dim,)),
        "fc_weight": u(keys[4], (input_dim, hidden_dim)),
        "fc_bias": u(keys[5], (input_dim,)),
    }


if __name__ == "__main__":
    B, T, input_dim, hidden_dim = 2, 8, 16, 32

    root = jax.random.PRNGKey(0)
    k_p, k_x, k_h, k_c = jax.random.split(root, 4)

    params = _init_params(k_p, input_dim, hidden_dim)
    x = jax.random.normal(k_x, (B, T, input_dim), jnp.float32)
    hidden = jax.random.normal(k_h, (1, B, hidden_dim), jnp.float32)
    condition = jax.random.normal(k_c, (B, T, hidden_dim), jnp.float32)

    ref_out, ref_h = _reference_forward(x, hidden, condition, params)

    # f32 operands: exact-parity check against the pure-JAX reference.
    fwd_f32 = jax.jit(functools.partial(conditional_decoder_forward,
                                        params=params, matmul_dtype=jnp.float32))
    out32, h32 = fwd_f32(x, hidden, condition)
    jax.block_until_ready((out32, h32))
    assert out32.shape == (B, T, input_dim) and h32.shape == (1, B, hidden_dim)
    assert jnp.allclose(out32, ref_out, rtol=1e-4, atol=1e-4), \
        float(jnp.max(jnp.abs(out32 - ref_out)))
    assert jnp.allclose(h32, ref_h, rtol=1e-4, atol=1e-4), \
        float(jnp.max(jnp.abs(h32 - ref_h)))

    # Default path (bf16 matmul operands / intermediates): bf16-aware tolerance.
    fwd = jax.jit(functools.partial(conditional_decoder_forward, params=params))
    out, h_out = fwd(x, hidden, condition)
    jax.block_until_ready((out, h_out))
    assert out.shape == (B, T, input_dim) and h_out.shape == (1, B, hidden_dim)
    assert jnp.allclose(out, ref_out, rtol=1e-1, atol=1e-1), \
        float(jnp.max(jnp.abs(out - ref_out)))
    assert jnp.allclose(h_out, ref_h, rtol=1e-1, atol=1e-1), \
        float(jnp.max(jnp.abs(h_out - ref_h)))

    print("KERNEL_OK")
</pallas_src>

<mosaic_0001>
module attributes {stable_mosaic.version = 11 : i64} {
  func.func @_matmul_bias_kernel(%arg0: i32, %arg1: memref<64x48xf32, #tpu.memory_space<vmem>>, %arg2: memref<48x384xf32, #tpu.memory_space<vmem>>, %arg3: memref<1x384xf32, #tpu.memory_space<vmem>>, %arg4: memref<64x384xf32, #tpu.memory_space<vmem>>) attributes {dimension_semantics = [#tpu.dimension_semantics<parallel>], iteration_bounds = array<i64: 1>, scalar_prefetch = 0 : i64, scratch_operands = 0 : i64, tpu.core_type = #tpu.core_type<tc>, window_params = [{transform_indices = @transform_0, window_bounds = array<i64: 64, 48>}, {pipeline_mode = #tpu.pipeline_mode<synchronous>, transform_indices = @transform_1, window_bounds = array<i64: 48, 384>}, {pipeline_mode = #tpu.pipeline_mode<synchronous>, transform_indices = @transform_2, window_bounds = array<i64: 1, 384>}, {transform_indices = @transform_3, window_bounds = array<i64: 64, 384>}]} {
    %c0 = arith.constant 0 : index
    %c0_0 = arith.constant 0 : index
    %0 = vector.load %arg1[%c0, %c0_0] : memref<64x48xf32, #tpu.memory_space<vmem>>, vector<64x48xf32>
    %c0_1 = arith.constant 0 : index
    %c0_2 = arith.constant 0 : index
    %1 = vector.load %arg2[%c0_1, %c0_2] : memref<48x384xf32, #tpu.memory_space<vmem>>, vector<48x384xf32>
    %cst = arith.constant dense<0.000000e+00> : vector<64x384xf32>
    %2 = tpu.matmul %0, %1, %cst {dimension_numbers = #tpu.dot_dimension_numbers<[1], [0], [0], [1], [0, 0, 1, 1], [], []>} : vector<64x48xf32>, vector<48x384xf32>, vector<64x384xf32> -> vector<64x384xf32>
    %c0_3 = arith.constant 0 : index
    %c0_4 = arith.constant 0 : index
    %3 = vector.load %arg3[%c0_3, %c0_4] : memref<1x384xf32, #tpu.memory_space<vmem>>, vector<1x384xf32>
    %4 = vector.broadcast %3 : vector<1x384xf32> to vector<64x384xf32>
    %5 = arith.addf %2, %4 : vector<64x384xf32>
    %c0_5 = arith.constant 0 : index
    %c0_6 = arith.constant 0 : index
    %6 = vector.load %arg4[%c0_5, %c0_6] : memref<64x384xf32, #tpu.memory_space<vmem>>, vector<64x384xf32>
    tpu.vector_store %arg4[%c0_5, %c0_6], %5 {strides = array<i32>} : memref<64x384xf32, #tpu.memory_space<vmem>>, vector<64x384xf32>,
    return
  }
  func.func @transform_0(%arg0: i32) -> (i32, i32) {
    %c0_i32 = arith.constant 0 : i32
    %c0_i32_0 = arith.constant 0 : i32
    return %arg0, %c0_i32 : i32, i32
  }
  func.func @transform_1(%arg0: i32) -> (i32, i32) {
    %c0_i32 = arith.constant 0 : i32
    %c0_i32_0 = arith.constant 0 : i32
    %c0_i32_1 = arith.constant 0 : i32
    return %c0_i32, %c0_i32_0 : i32, i32
  }
  func.func @transform_2(%arg0: i32) -> (i32, i32) {
    %c0_i32 = arith.constant 0 : i32
    %c0_i32_0 = arith.constant 0 : i32
    %c0_i32_1 = arith.constant 0 : i32
    return %c0_i32, %c0_i32_0 : i32, i32
  }
  func.func @transform_3(%arg0: i32) -> (i32, i32) {
    %c0_i32 = arith.constant 0 : i32
    %c0_i32_0 = arith.constant 0 : i32
    return %arg0, %c0_i32 : i32, i32
  }
}

module attributes {stable_mosaic.version = 11 : i64} {
  func.func @_matmul_bias_kernel(%arg0: i32, %arg1: memref<64x128xf32, #tpu.memory_space<vmem>>, %arg2: memref<128x128xf32, #tpu.memory_space<vmem>>, %arg3: memref<1x128xf32, #tpu.memory_space<vmem>>, %arg4: memref<64x128xf32, #tpu.memory_space<vmem>>) attributes {dimension_semantics = [#tpu.dimension_semantics<parallel>], iteration_bounds = array<i64: 1>, scalar_prefetch = 0 : i64, scratch_operands = 0 : i64, tpu.core_type = #tpu.core_type<tc>, window_params = [{transform_indices = @transform_0, window_bounds = array<i64: 64, 128>}, {pipeline_mode = #tpu.pipeline_mode<synchronous>, transform_indices = @transform_1, window_bounds = array<i64: 128, 128>}, {pipeline_mode = #tpu.pipeline_mode<synchronous>, transform_indices = @transform_2, window_bounds = array<i64: 1, 128>}, {transform_indices = @transform_3, window_bounds = array<i64: 64, 128>}]} {
    %c0 = arith.constant 0 : index
    %c0_0 = arith.constant 0 : index
    %0 = vector.load %arg1[%c0, %c0_0] : memref<64x128xf32, #tpu.memory_space<vmem>>, vector<64x128xf32>
    %c0_1 = arith.constant 0 : index
    %c0_2 = arith.constant 0 : index
    %1 = vector.load %arg2[%c0_1, %c0_2] : memref<128x128xf32, #tpu.memory_space<vmem>>, vector<128x128xf32>
    %cst = arith.constant dense<0.000000e+00> : vector<64x128xf32>
    %2 = tpu.matmul %0, %1, %cst {dimension_numbers = #tpu.dot_dimension_numbers<[1], [0], [0], [1], [0, 0, 1, 1], [], []>} : vector<64x128xf32>, vector<128x128xf32>, vector<64x128xf32> -> vector<64x128xf32>
    %c0_3 = arith.constant 0 : index
    %c0_4 = arith.constant 0 : index
    %3 = vector.load %arg3[%c0_3, %c0_4] : memref<1x128xf32, #tpu.memory_space<vmem>>, vector<1x128xf32>
    %4 = vector.broadcast %3 : vector<1x128xf32> to vector<64x128xf32>
    %5 = arith.addf %2, %4 : vector<64x128xf32>
    %c0_5 = arith.constant 0 : index
    %c0_6 = arith.constant 0 : index
    %6 = vector.load %arg4[%c0_5, %c0_6] : memref<64x128xf32, #tpu.memory_space<vmem>>, vector<64x128xf32>
    tpu.vector_store %arg4[%c0_5, %c0_6], %5 {strides = array<i32>} : memref<64x128xf32, #tpu.memory_space<vmem>>, vector<64x128xf32>,
    return
  }
  func.func @transform_0(%arg0: i32) -> (i32, i32) {
    %c0_i32 = arith.constant 0 : i32
    %c0_i32_0 = arith.constant 0 : i32
    return %arg0, %c0_i32 : i32, i32
  }
  func.func @transform_1(%arg0: i32) -> (i32, i32) {
    %c0_i32 = arith.constant 0 : i32
    %c0_i32_0 = arith.constant 0 : i32
    %c0_i32_1 = arith.constant 0 : i32
    return %c0_i32, %c0_i32_0 : i32, i32
  }
  func.func @transform_2(%arg0: i32) -> (i32, i32) {
    %c0_i32 = arith.constant 0 : i32
    %c0_i32_0 = arith.constant 0 : i32
    %c0_i32_1 = arith.constant 0 : i32
    return %c0_i32, %c0_i32_0 : i32, i32
  }
  func.func @transform_3(%arg0: i32) -> (i32, i32) {
    %c0_i32 = arith.constant 0 : i32
    %c0_i32_0 = arith.constant 0 : i32
    return %arg0, %c0_i32 : i32, i32
  }
}

module attributes {stable_mosaic.version = 11 : i64} {
  func.func @_gru_chunk_kernel(%arg0: i32, %arg1: i32, %arg2: memref<8x8x384xf32, #tpu.memory_space<vmem>>, %arg3: memref<8x128xf32, #tpu.memory_space<vmem>>, %arg4: memref<128x384xf32, #tpu.memory_space<vmem>>, %arg5: memref<1x128xf32, #tpu.memory_space<vmem>>, %arg6: memref<8x8x128xf32, #tpu.memory_space<vmem>>, %arg7: memref<8x128xf32, #tpu.memory_space<vmem>>) attributes {dimension_semantics = [#tpu.dimension_semantics<parallel>, #tpu.dimension_semantics<arbitrary>], iteration_bounds = array<i64: 1, 1>, scalar_prefetch = 0 : i64, scratch_operands = 0 : i64, tpu.core_type = #tpu.core_type<tc>, window_params = [{transform_indices = @transform_0, window_bounds = array<i64: 8, 8, 384>}, {transform_indices = @transform_1, window_bounds = array<i64: 8, 128>}, {pipeline_mode = #tpu.pipeline_mode<synchronous>, transform_indices = @transform_2, window_bounds = array<i64: 128, 384>}, {pipeline_mode = #tpu.pipeline_mode<synchronous>, transform_indices = @transform_3, window_bounds = array<i64: 1, 128>}, {transform_indices = @transform_4, window_bounds = array<i64: 8, 8, 128>}, {transform_indices = @transform_5, window_bounds = array<i64: 8, 128>}]} {
    %c0_i32 = arith.constant 0 : i32
    %0 = arith.cmpi eq, %arg1, %c0_i32 : i32
    %1 = arith.extui %0 : i1 to i32
    %c0_i32_0 = arith.constant 0 : i32
    %2 = arith.cmpi ne, %1, %c0_i32_0 : i32
    scf.if %2 {
      %c0_126 = arith.constant 0 : index
      %c0_127 = arith.constant 0 : index
      %312 = vector.load %arg3[%c0_126, %c0_127] : memref<8x128xf32, #tpu.memory_space<vmem>>, vector<8x128xf32>
      %c0_128 = arith.constant 0 : index
      %c0_129 = arith.constant 0 : index
      %313 = vector.load %arg7[%c0_128, %c0_129] : memref<8x128xf32, #tpu.memory_space<vmem>>, vector<8x128xf32>
      tpu.vector_store %arg7[%c0_128, %c0_129], %312 {strides = array<i32>} : memref<8x128xf32, #tpu.memory_space<vmem>>, vector<8x128xf32>,
    } else {
    }
    %c0 = arith.constant 0 : index
    %c0_1 = arith.constant 0 : index
    %3 = vector.load %arg7[%c0, %c0_1] : memref<8x128xf32, #tpu.memory_space<vmem>>, vector<8x128xf32>
    %c0_2 = arith.constant 0 : index
    %c0_3 = arith.constant 0 : index
    %4 = vector.load %arg5[%c0_2, %c0_3] : memref<1x128xf32, #tpu.memory_space<vmem>>, vector<1x128xf32>
    %5 = vector.shape_cast %4 : vector<1x128xf32> to vector<1x128xf32>
    %6 = vector.broadcast %5 : vector<1x128xf32> to vector<8x128xf32>
    %c0_4 = arith.constant 0 : index
    %c0_5 = arith.constant 0 : index
    %c0_6 = arith.constant 0 : index
    %7 = vector.load %arg2[%c0_4, %c0_5, %c0_6] : memref<8x8x384xf32, #tpu.memory_space<vmem>>, vector<1x8x384xf32>
    %8 = vector.shape_cast %7 : vector<1x8x384xf32> to vector<8x384xf32>
    %c0_7 = arith.constant 0 : index
    %c0_8 = arith.constant 0 : index
    %9 = vector.load %arg4[%c0_7, %c0_8] : memref<128x384xf32, #tpu.memory_space<vmem>>, vector<128x384xf32>
    %cst = arith.constant dense<0.000000e+00> : vector<8x384xf32>
    %10 = tpu.matmul %3, %9, %cst {dimension_numbers = #tpu.dot_dimension_numbers<[1], [0], [0], [1], [0, 0, 1, 1], [], []>} : vector<8x128xf32>, vector<128x384xf32>, vector<8x384xf32> -> vector<8x384xf32>
    %11 = vector.extract_strided_slice %8 {offsets = [0, 0], sizes = [8, 128], strides = [1, 1]} : vector<8x384xf32> to vector<8x128xf32>
    %12 = vector.extract_strided_slice %10 {offsets = [0, 0], sizes = [8, 128], strides = [1, 1]} : vector<8x384xf32> to vector<8x128xf32>
    %13 = arith.addf %11, %12 : vector<8x128xf32>
    %cst_9 = arith.constant 5.000000e-01 : f32
    %14 = vector.broadcast %cst_9 : f32 to vector<8x128xf32>
    %15 = arith.mulf %14, %13 : vector<8x128xf32>
    %16 = math.tanh %15 : vector<8x128xf32>
    %cst_10 = arith.constant 1.000000e+00 : f32
    %17 = vector.broadcast %cst_10 : f32 to vector<8x128xf32>
    %18 = arith.addf %16, %17 : vector<8x128xf32>
    %cst_11 = arith.constant 5.000000e-01 : f32
    %19 = vector.broadcast %cst_11 : f32 to vector<8x128xf32>
    %20 = arith.mulf %19, %18 : vector<8x128xf32>
    %21 = vector.extract_strided_slice %8 {offsets = [0, 128], sizes = [8, 128], strides = [1, 1]} : vector<8x384xf32> to vector<8x128xf32>
    %22 = vector.extract_strided_slice %10 {offsets = [0, 128], sizes = [8, 128], strides = [1, 1]} : vector<8x384xf32> to vector<8x128xf32>
    %23 = arith.addf %21, %22 : vector<8x128xf32>
    %cst_12 = arith.constant 5.000000e-01 : f32
    %24 = vector.broadcast %cst_12 : f32 to vector<8x128xf32>
    %25 = arith.mulf %24, %23 : vector<8x128xf32>
    %26 = math.tanh %25 : vector<8x128xf32>
    %cst_13 = arith.constant 1.000000e+00 : f32
    %27 = vector.broadcast %cst_13 : f32 to vector<8x128xf32>
    %28 = arith.addf %26, %27 : vector<8x128xf32>
    %cst_14 = arith.constant 5.000000e-01 : f32
    %29 = vector.broadcast %cst_14 : f32 to vector<8x128xf32>
    %30 = arith.mulf %29, %28 : vector<8x128xf32>
    %31 = vector.extract_strided_slice %8 {offsets = [0, 256], sizes = [8, 128], strides = [1, 1]} : vector<8x384xf32> to vector<8x128xf32>
    %32 = vector.extract_strided_slice %10 {offsets = [0, 256], sizes = [8, 128], strides = [1, 1]} : vector<8x384xf32> to vector<8x128xf32>
    %33 = arith.addf %32, %6 : vector<8x128xf32>
    %34 = arith.mulf %20, %33 : vector<8x128xf32>
    %35 = arith.addf %31, %34 : vector<8x128xf32>
    %36 = math.tanh %35 : vector<8x128xf32>
    %cst_15 = arith.constant 1.000000e+00 : f32
    %37 = vector.broadcast %cst_15 : f32 to vector<8x128xf32>
    %38 = arith.subf %37, %30 : vector<8x128xf32>
    %39 = arith.mulf %38, %36 : vector<8x128xf32>
    %40 = arith.mulf %30, %3 : vector<8x128xf32>
    %41 = arith.addf %39, %40 : vector<8x128xf32>
    %c0_16 = arith.constant 0 : index
    %c0_17 = arith.constant 0 : index
    %c0_18 = arith.constant 0 : index
    %42 = vector.load %arg6[%c0_16, %c0_17, %c0_18] : memref<8x8x128xf32, #tpu.memory_space<vmem>>, vector<1x8x128xf32>
    %43 = vector.shape_cast %42 : vector<1x8x128xf32> to vector<8x128xf32>
    %44 = vector.shape_cast %41 : vector<8x128xf32> to vector<1x8x128xf32>
    tpu.vector_store %arg6[%c0_16, %c0_17, %c0_18], %44 {strides = array<i32>} : memref<8x8x128xf32, #tpu.memory_space<vmem>>, vector<1x8x128xf32>,
    %c1 = arith.constant 1 : index
    %c0_19 = arith.constant 0 : index
    %c0_20 = arith.constant 0 : index
    %45 = vector.load %arg2[%c1, %c0_19, %c0_20] : memref<8x8x384xf32, #tpu.memory_space<vmem>>, vector<1x8x384xf32>
    %46 = vector.shape_cast %45 : vector<1x8x384xf32> to vector<8x384xf32>
    %c0_21 = arith.constant 0 : index
    %c0_22 = arith.constant 0 : index
    %47 = vector.load %arg4[%c0_21, %c0_22] : memref<128x384xf32, #tpu.memory_space<vmem>>, vector<128x384xf32>
    %cst_23 = arith.constant dense<0.000000e+00> : vector<8x384xf32>
    %48 = tpu.matmul %41, %47, %cst_23 {dimension_numbers = #tpu.dot_dimension_numbers<[1], [0], [0], [1], [0, 0, 1, 1], [], []>} : vector<8x128xf32>, vector<128x384xf32>, vector<8x384xf32> -> vector<8x384xf32>
    %49 = vector.extract_strided_slice %46 {offsets = [0, 0], sizes = [8, 128], strides = [1, 1]} : vector<8x384xf32> to vector<8x128xf32>
    %50 = vector.extract_strided_slice %48 {offsets = [0, 0], sizes = [8, 128], strides = [1, 1]} : vector<8x384xf32> to vector<8x128xf32>
    %51 = arith.addf %49, %50 : vector<8x128xf32>
    %cst_24 = arith.constant 5.000000e-01 : f32
    %52 = vector.broadcast %cst_24 : f32 to vector<8x128xf32>
    %53 = arith.mulf %52, %51 : vector<8x128xf32>
    %54 = math.tanh %53 : vector<8x128xf32>
    %cst_25 = arith.constant 1.000000e+00 : f32
    %55 = vector.broadcast %cst_25 : f32 to vector<8x128xf32>
    %56 = arith.addf %54, %55 : vector<8x128xf32>
    %cst_26 = arith.constant 5.000000e-01 : f32
    %57 = vector.broadcast %cst_26 : f32 to vector<8x128xf32>
    %58 = arith.mulf %57, %56 : vector<8x128xf32>
    %59 = vector.extract_strided_slice %46 {offsets = [0, 128], sizes = [8, 128], strides = [1, 1]} : vector<8x384xf32> to vector<8x128xf32>
    %60 = vector.extract_strided_slice %48 {offsets = [0, 128], sizes = [8, 128], strides = [1, 1]} : vector<8x384xf32> to vector<8x128xf32>
    %61 = arith.addf %59, %60 : vector<8x128xf32>
    %cst_27 = arith.constant 5.000000e-01 : f32
    %62 = vector.broadcast %cst_27 : f32 to vector<8x128xf32>
    %63 = arith.mulf %62, %61 : vector<8x128xf32>
    %64 = math.tanh %63 : vector<8x128xf32>
    %cst_28 = arith.constant 1.000000e+00 : f32
    %65 = vector.broadcast %cst_28 : f32 to vector<8x128xf32>
    %66 = arith.addf %64, %65 : vector<8x128xf32>
    %cst_29 = arith.constant 5.000000e-01 : f32
    %67 = vector.broadcast %cst_29 : f32 to vector<8x128xf32>
    %68 = arith.mulf %67, %66 : vector<8x128xf32>
    %69 = vector.extract_strided_slice %46 {offsets = [0, 256], sizes = [8, 128], strides = [1, 1]} : vector<8x384xf32> to vector<8x128xf32>
    %70 = vector.extract_strided_slice %48 {offsets = [0, 256], sizes = [8, 128], strides = [1, 1]} : vector<8x384xf32> to vector<8x128xf32>
    %71 = arith.addf %70, %6 : vector<8x128xf32>
    %72 = arith.mulf %58, %71 : vector<8x128xf32>
    %73 = arith.addf %69, %72 : vector<8x128xf32>
    %74 = math.tanh %73 : vector<8x128xf32>
    %cst_30 = arith.constant 1.000000e+00 : f32
    %75 = vector.broadcast %cst_30 : f32 to vector<8x128xf32>
    %76 = arith.subf %75, %68 : vector<8x128xf32>
    %77 = arith.mulf %76, %74 : vector<8x128xf32>
    %78 = arith.mulf %68, %41 : vector<8x128xf32>
    %79 = arith.addf %77, %78 : vector<8x128xf32>
    %c1_31 = arith.constant 1 : index
    %c0_32 = arith.constant 0 : index
    %c0_33 = arith.constant 0 : index
    %80 = vector.load %arg6[%c1_31, %c0_32, %c0_33] : memref<8x8x128xf32, #tpu.memory_space<vmem>>, vector<1x8x128xf32>
    %81 = vector.shape_cast %80 : vector<1x8x128xf32> to vector<8x128xf32>
    %82 = vector.shape_cast %79 : vector<8x128xf32> to vector<1x8x128xf32>
    tpu.vector_store %arg6[%c1_31, %c0_32, %c0_33], %82 {strides = array<i32>} : memref<8x8x128xf32, #tpu.memory_space<vmem>>, vector<1x8x128xf32>,
    %c2 = arith.constant 2 : index
    %c0_34 = arith.constant 0 : index
    %c0_35 = arith.constant 0 : index
    %83 = vector.load %arg2[%c2, %c0_34, %c0_35] : memref<8x8x384xf32, #tpu.memory_space<vmem>>, vector<1x8x384xf32>
    %84 = vector.shape_cast %83 : vector<1x8x384xf32> to vector<8x384xf32>
    %c0_36 = arith.constant 0 : index
    %c0_37 = arith.constant 0 : index
    %85 = vector.load %arg4[%c0_36, %c0_37] : memref<128x384xf32, #tpu.memory_space<vmem>>, vector<128x384xf32>
    %cst_38 = arith.constant dense<0.000000e+00> : vector<8x384xf32>
    %86 = tpu.matmul %79, %85, %cst_38 {dimension_numbers = #tpu.dot_dimension_numbers<[1], [0], [0], [1], [0, 0, 1, 1], [], []>} : vector<8x128xf32>, vector<128x384xf32>, vector<8x384xf32> -> vector<8x384xf32>
    %87 = vector.extract_strided_slice %84 {offsets = [0, 0], sizes = [8, 128], strides = [1, 1]} : vector<8x384xf32> to vector<8x128xf32>
    %88 = vector.extract_strided_slice %86 {offsets = [0, 0], sizes = [8, 128], strides = [1, 1]} : vector<8x384xf32> to vector<8x128xf32>
    %89 = arith.addf %87, %88 : vector<8x128xf32>
    %cst_39 = arith.constant 5.000000e-01 : f32
    %90 = vector.broadcast %cst_39 : f32 to vector<8x128xf32>
    %91 = arith.mulf %90, %89 : vector<8x128xf32>
    %92 = math.tanh %91 : vector<8x128xf32>
    %cst_40 = arith.constant 1.000000e+00 : f32
    %93 = vector.broadcast %cst_40 : f32 to vector<8x128xf32>
    %94 = arith.addf %92, %93 : vector<8x128xf32>
    %cst_41 = arith.constant 5.000000e-01 : f32
    %95 = vector.broadcast %cst_41 : f32 to vector<8x128xf32>
    %96 = arith.mulf %95, %94 : vector<8x128xf32>
    %97 = vector.extract_strided_slice %84 {offsets = [0, 128], sizes = [8, 128], strides = [1, 1]} : vector<8x384xf32> to vector<8x128xf32>
    %98 = vector.extract_strided_slice %86 {offsets = [0, 128], sizes = [8, 128], strides = [1, 1]} : vector<8x384xf32> to vector<8x128xf32>
    %99 = arith.addf %97, %98 : vector<8x128xf32>
    %cst_42 = arith.constant 5.000000e-01 : f32
    %100 = vector.broadcast %cst_42 : f32 to vector<8x128xf32>
    %101 = arith.mulf %100, %99 : vector<8x128xf32>
    %102 = math.tanh %101 : vector<8x128xf32>
    %cst_43 = arith.constant 1.000000e+00 : f32
    %103 = vector.broadcast %cst_43 : f32 to vector<8x128xf32>
    %104 = arith.addf %102, %103 : vector<8x128xf32>
    %cst_44 = arith.constant 5.000000e-01 : f32
    %105 = vector.broadcast %cst_44 : f32 to vector<8x128xf32>
    %106 = arith.mulf %105, %104 : vector<8x128xf32>
    %107 = vector.extract_strided_slice %84 {offsets = [0, 256], sizes = [8, 128], strides = [1, 1]} : vector<8x384xf32> to vector<8x128xf32>
    %108 = vector.extract_strided_slice %86 {offsets = [0, 256], sizes = [8, 128], strides = [1, 1]} : vector<8x384xf32> to vector<8x128xf32>
    %109 = arith.addf %108, %6 : vector<8x128xf32>
    %110 = arith.mulf %96, %109 : vector<8x128xf32>
    %111 = arith.addf %107, %110 : vector<8x128xf32>
    %112 = math.tanh %111 : vector<8x128xf32>
    %cst_45 = arith.constant 1.000000e+00 : f32
    %113 = vector.broadcast %cst_45 : f32 to vector<8x128xf32>
    %114 = arith.subf %113, %106 : vector<8x128xf32>
    %115 = arith.mulf %114, %112 : vector<8x128xf32>
    %116 = arith.mulf %106, %79 : vector<8x128xf32>
    %117 = arith.addf %115, %116 : vector<8x128xf32>
    %c2_46 = arith.constant 2 : index
    %c0_47 = arith.constant 0 : index
    %c0_48 = arith.constant 0 : index
    %118 = vector.load %arg6[%c2_46, %c0_47, %c0_48] : memref<8x8x128xf32, #tpu.memory_space<vmem>>, vector<1x8x128xf32>
    %119 = vector.shape_cast %118 : vector<1x8x128xf32> to vector<8x128xf32>
    %120 = vector.shape_cast %117 : vector<8x128xf32> to vector<1x8x128xf32>
    tpu.vector_store %arg6[%c2_46, %c0_47, %c0_48], %120 {strides = array<i32>} : memref<8x8x128xf32, #tpu.memory_space<vmem>>, vector<1x8x128xf32>,
    %c3 = arith.constant 3 : index
    %c0_49 = arith.constant 0 : index
    %c0_50 = arith.constant 0 : index
    %121 = vector.load %arg2[%c3, %c0_49, %c0_50] : memref<8x8x384xf32, #tpu.memory_space<vmem>>, vector<1x8x384xf32>
    %122 = vector.shape_cast %121 : vector<1x8x384xf32> to vector<8x384xf32>
    %c0_51 = arith.constant 0 : index
    %c0_52 = arith.constant 0 : index
    %123 = vector.load %arg4[%c0_51, %c0_52] : memref<128x384xf32, #tpu.memory_space<vmem>>, vector<128x384xf32>
    %cst_53 = arith.constant dense<0.000000e+00> : vector<8x384xf32>
    %124 = tpu.matmul %117, %123, %cst_53 {dimension_numbers = #tpu.dot_dimension_numbers<[1], [0], [0], [1], [0, 0, 1, 1], [], []>} : vector<8x128xf32>, vector<128x384xf32>, vector<8x384xf32> -> vector<8x384xf32>
    %125 = vector.extract_strided_slice %122 {offsets = [0, 0], sizes = [8, 128], strides = [1, 1]} : vector<8x384xf32> to vector<8x128xf32>
    %126 = vector.extract_strided_slice %124 {offsets = [0, 0], sizes = [8, 128], strides = [1, 1]} : vector<8x384xf32> to vector<8x128xf32>
    %127 = arith.addf %125, %126 : vector<8x128xf32>
    %cst_54 = arith.constant 5.000000e-01 : f32
    %128 = vector.broadcast %cst_54 : f32 to vector<8x128xf32>
    %129 = arith.mulf %128, %127 : vector<8x128xf32>
    %130 = math.tanh %129 : vector<8x128xf32>
    %cst_55 = arith.constant 1.000000e+00 : f32
    %131 = vector.broadcast %cst_55 : f32 to vector<8x128xf32>
    %132 = arith.addf %130, %131 : vector<8x128xf32>
    %cst_56 = arith.constant 5.000000e-01 : f32
    %133 = vector.broadcast %cst_56 : f32 to vector<8x128xf32>
    %134 = arith.mulf %133, %132 : vector<8x128xf32>
    %135 = vector.extract_strided_slice %122 {offsets = [0, 128], sizes = [8, 128], strides = [1, 1]} : vector<8x384xf32> to vector<8x128xf32>
    %136 = vector.extract_strided_slice %124 {offsets = [0, 128], sizes = [8, 128], strides = [1, 1]} : vector<8x384xf32> to vector<8x128xf32>
    %137 = arith.addf %135, %136 : vector<8x128xf32>
    %cst_57 = arith.constant 5.000000e-01 : f32
    %138 = vector.broadcast %cst_57 : f32 to vector<8x128xf32>
    %139 = arith.mulf %138, %137 : vector<8x128xf32>
    %140 = math.tanh %139 : vector<8x128xf32>
    %cst_58 = arith.constant 1.000000e+00 : f32
    %141 = vector.broadcast %cst_58 : f32 to vector<8x128xf32>
    %142 = arith.addf %140, %141 : vector<8x128xf32>
    %cst_59 = arith.constant 5.000000e-01 : f32
    %143 = vector.broadcast %cst_59 : f32 to vector<8x128xf32>
    %144 = arith.mulf %143, %142 : vector<8x128xf32>
    %145 = vector.extract_strided_slice %122 {offsets = [0, 256], sizes = [8, 128], strides = [1, 1]} : vector<8x384xf32> to vector<8x128xf32>
    %146 = vector.extract_strided_slice %124 {offsets = [0, 256], sizes = [8, 128], strides = [1, 1]} : vector<8x384xf32> to vector<8x128xf32>
    %147 = arith.addf %146, %6 : vector<8x128xf32>
    %148 = arith.mulf %134, %147 : vector<8x128xf32>
    %149 = arith.addf %145, %148 : vector<8x128xf32>
    %150 = math.tanh %149 : vector<8x128xf32>
    %cst_60 = arith.constant 1.000000e+00 : f32
    %151 = vector.broadcast %cst_60 : f32 to vector<8x128xf32>
    %152 = arith.subf %151, %144 : vector<8x128xf32>
    %153 = arith.mulf %152, %150 : vector<8x128xf32>
    %154 = arith.mulf %144, %117 : vector<8x128xf32>
    %155 = arith.addf %153, %154 : vector<8x128xf32>
    %c3_61 = arith.constant 3 : index
    %c0_62 = arith.constant 0 : index
    %c0_63 = arith.constant 0 : index
    %156 = vector.load %arg6[%c3_61, %c0_62, %c0_63] : memref<8x8x128xf32, #tpu.memory_space<vmem>>, vector<1x8x128xf32>
    %157 = vector.shape_cast %156 : vector<1x8x128xf32> to vector<8x128xf32>
    %158 = vector.shape_cast %155 : vector<8x128xf32> to vector<1x8x128xf32>
    tpu.vector_store %arg6[%c3_61, %c0_62, %c0_63], %158 {strides = array<i32>} : memref<8x8x128xf32, #tpu.memory_space<vmem>>, vector<1x8x128xf32>,
    %c4 = arith.constant 4 : index
    %c0_64 = arith.constant 0 : index
    %c0_65 = arith.constant 0 : index
    %159 = vector.load %arg2[%c4, %c0_64, %c0_65] : memref<8x8x384xf32, #tpu.memory_space<vmem>>, vector<1x8x384xf32>
    %160 = vector.shape_cast %159 : vector<1x8x384xf32> to vector<8x384xf32>
    %c0_66 = arith.constant 0 : index
    %c0_67 = arith.constant 0 : index
    %161 = vector.load %arg4[%c0_66, %c0_67] : memref<128x384xf32, #tpu.memory_space<vmem>>, vector<128x384xf32>
    %cst_68 = arith.constant dense<0.000000e+00> : vector<8x384xf32>
    %162 = tpu.matmul %155, %161, %cst_68 {dimension_numbers = #tpu.dot_dimension_numbers<[1], [0], [0], [1], [0, 0, 1, 1], [], []>} : vector<8x128xf32>, vector<128x384xf32>, vector<8x384xf32> -> vector<8x384xf32>
    %163 = vector.extract_strided_slice %160 {offsets = [0, 0], sizes = [8, 128], strides = [1, 1]} : vector<8x384xf32> to vector<8x128xf32>
    %164 = vector.extract_strided_slice %162 {offsets = [0, 0], sizes = [8, 128], strides = [1, 1]} : vector<8x384xf32> to vector<8x128xf32>
    %165 = arith.addf %163, %164 : vector<8x128xf32>
    %cst_69 = arith.constant 5.000000e-01 : f32
    %166 = vector.broadcast %cst_69 : f32 to vector<8x128xf32>
    %167 = arith.mulf %166, %165 : vector<8x128xf32>
    %168 = math.tanh %167 : vector<8x128xf32>
    %cst_70 = arith.constant 1.000000e+00 : f32
    %169 = vector.broadcast %cst_70 : f32 to vector<8x128xf32>
    %170 = arith.addf %168, %169 : vector<8x128xf32>
    %cst_71 = arith.constant 5.000000e-01 : f32
    %171 = vector.broadcast %cst_71 : f32 to vector<8x128xf32>
    %172 = arith.mulf %171, %170 : vector<8x128xf32>
    %173 = vector.extract_strided_slice %160 {offsets = [0, 128], sizes = [8, 128], strides = [1, 1]} : vector<8x384xf32> to vector<8x128xf32>
    %174 = vector.extract_strided_slice %162 {offsets = [0, 128], sizes = [8, 128], strides = [1, 1]} : vector<8x384xf32> to vector<8x128xf32>
    %175 = arith.addf %173, %174 : vector<8x128xf32>
    %cst_72 = arith.constant 5.000000e-01 : f32
    %176 = vector.broadcast %cst_72 : f32 to vector<8x128xf32>
    %177 = arith.mulf %176, %175 : vector<8x128xf32>
    %178 = math.tanh %177 : vector<8x128xf32>
    %cst_73 = arith.constant 1.000000e+00 : f32
    %179 = vector.broadcast %cst_73 : f32 to vector<8x128xf32>
    %180 = arith.addf %178, %179 : vector<8x128xf32>
    %cst_74 = arith.constant 5.000000e-01 : f32
    %181 = vector.broadcast %cst_74 : f32 to vector<8x128xf32>
    %182 = arith.mulf %181, %180 : vector<8x128xf32>
    %183 = vector.extract_strided_slice %160 {offsets = [0, 256], sizes = [8, 128], strides = [1, 1]} : vector<8x384xf32> to vector<8x128xf32>
    %184 = vector.extract_strided_slice %162 {offsets = [0, 256], sizes = [8, 128], strides = [1, 1]} : vector<8x384xf32> to vector<8x128xf32>
    %185 = arith.addf %184, %6 : vector<8x128xf32>
    %186 = arith.mulf %172, %185 : vector<8x128xf32>
    %187 = arith.addf %183, %186 : vector<8x128xf32>
    %188 = math.tanh %187 : vector<8x128xf32>
    %cst_75 = arith.constant 1.000000e+00 : f32
    %189 = vector.broadcast %cst_75 : f32 to vector<8x128xf32>
    %190 = arith.subf %189, %182 : vector<8x128xf32>
    %191 = arith.mulf %190, %188 : vector<8x128xf32>
    %192 = arith.mulf %182, %155 : vector<8x128xf32>
    %193 = arith.addf %191, %192 : vector<8x128xf32>
    %c4_76 = arith.constant 4 : index
    %c0_77 = arith.constant 0 : index
    %c0_78 = arith.constant 0 : index
    %194 = vector.load %arg6[%c4_76, %c0_77, %c0_78] : memref<8x8x128xf32, #tpu.memory_space<vmem>>, vector<1x8x128xf32>
    %195 = vector.shape_cast %194 : vector<1x8x128xf32> to vector<8x128xf32>
    %196 = vector.shape_cast %193 : vector<8x128xf32> to vector<1x8x128xf32>
    tpu.vector_store %arg6[%c4_76, %c0_77, %c0_78], %196 {strides = array<i32>} : memref<8x8x128xf32, #tpu.memory_space<vmem>>, vector<1x8x128xf32>,
    %c5 = arith.constant 5 : index
    %c0_79 = arith.constant 0 : index
    %c0_80 = arith.constant 0 : index
    %197 = vector.load %arg2[%c5, %c0_79, %c0_80] : memref<8x8x384xf32, #tpu.memory_space<vmem>>, vector<1x8x384xf32>
    %198 = vector.shape_cast %197 : vector<1x8x384xf32> to vector<8x384xf32>
    %c0_81 = arith.constant 0 : index
    %c0_82 = arith.constant 0 : index
    %199 = vector.load %arg4[%c0_81, %c0_82] : memref<128x384xf32, #tpu.memory_space<vmem>>, vector<128x384xf32>
    %cst_83 = arith.constant dense<0.000000e+00> : vector<8x384xf32>
    %200 = tpu.matmul %193, %199, %cst_83 {dimension_numbers = #tpu.dot_dimension_numbers<[1], [0], [0], [1], [0, 0, 1, 1], [], []>} : vector<8x128xf32>, vector<128x384xf32>, vector<8x384xf32> -> vector<8x384xf32>
    %201 = vector.extract_strided_slice %198 {offsets = [0, 0], sizes = [8, 128], strides = [1, 1]} : vector<8x384xf32> to vector<8x128xf32>
    %202 = vector.extract_strided_slice %200 {offsets = [0, 0], sizes = [8, 128], strides = [1, 1]} : vector<8x384xf32> to vector<8x128xf32>
    %203 = arith.addf %201, %202 : vector<8x128xf32>
    %cst_84 = arith.constant 5.000000e-01 : f32
    %204 = vector.broadcast %cst_84 : f32 to vector<8x128xf32>
    %205 = arith.mulf %204, %203 : vector<8x128xf32>
    %206 = math.tanh %205 : vector<8x128xf32>
    %cst_85 = arith.constant 1.000000e+00 : f32
    %207 = vector.broadcast %cst_85 : f32 to vector<8x128xf32>
    %208 = arith.addf %206, %207 : vector<8x128xf32>
    %cst_86 = arith.constant 5.000000e-01 : f32
    %209 = vector.broadcast %cst_86 : f32 to vector<8x128xf32>
    %210 = arith.mulf %209, %208 : vector<8x128xf32>
    %211 = vector.extract_strided_slice %198 {offsets = [0, 128], sizes = [8, 128], strides = [1, 1]} : vector<8x384xf32> to vector<8x128xf32>
    %212 = vector.extract_strided_slice %200 {offsets = [0, 128], sizes = [8, 128], strides = [1, 1]} : vector<8x384xf32> to vector<8x128xf32>
    %213 = arith.addf %211, %212 : vector<8x128xf32>
    %cst_87 = arith.constant 5.000000e-01 : f32
    %214 = vector.broadcast %cst_87 : f32 to vector<8x128xf32>
    %215 = arith.mulf %214, %213 : vector<8x128xf32>
    %216 = math.tanh %215 : vector<8x128xf32>
    %cst_88 = arith.constant 1.000000e+00 : f32
    %217 = vector.broadcast %cst_88 : f32 to vector<8x128xf32>
    %218 = arith.addf %216, %217 : vector<8x128xf32>
    %cst_89 = arith.constant 5.000000e-01 : f32
    %219 = vector.broadcast %cst_89 : f32 to vector<8x128xf32>
    %220 = arith.mulf %219, %218 : vector<8x128xf32>
    %221 = vector.extract_strided_slice %198 {offsets = [0, 256], sizes = [8, 128], strides = [1, 1]} : vector<8x384xf32> to vector<8x128xf32>
    %222 = vector.extract_strided_slice %200 {offsets = [0, 256], sizes = [8, 128], strides = [1, 1]} : vector<8x384xf32> to vector<8x128xf32>
    %223 = arith.addf %222, %6 : vector<8x128xf32>
    %224 = arith.mulf %210, %223 : vector<8x128xf32>
    %225 = arith.addf %221, %224 : vector<8x128xf32>
    %226 = math.tanh %225 : vector<8x128xf32>
    %cst_90 = arith.constant 1.000000e+00 : f32
    %227 = vector.broadcast %cst_90 : f32 to vector<8x128xf32>
    %228 = arith.subf %227, %220 : vector<8x128xf32>
    %229 = arith.mulf %228, %226 : vector<8x128xf32>
    %230 = arith.mulf %220, %193 : vector<8x128xf32>
    %231 = arith.addf %229, %230 : vector<8x128xf32>
    %c5_91 = arith.constant 5 : index
    %c0_92 = arith.constant 0 : index
    %c0_93 = arith.constant 0 : index
    %232 = vector.load %arg6[%c5_91, %c0_92, %c0_93] : memref<8x8x128xf32, #tpu.memory_space<vmem>>, vector<1x8x128xf32>
    %233 = vector.shape_cast %232 : vector<1x8x128xf32> to vector<8x128xf32>
    %234 = vector.shape_cast %231 : vector<8x128xf32> to vector<1x8x128xf32>
    tpu.vector_store %arg6[%c5_91, %c0_92, %c0_93], %234 {strides = array<i32>} : memref<8x8x128xf32, #tpu.memory_space<vmem>>, vector<1x8x128xf32>,
    %c6 = arith.constant 6 : index
    %c0_94 = arith.constant 0 : index
    %c0_95 = arith.constant 0 : index
    %235 = vector.load %arg2[%c6, %c0_94, %c0_95] : memref<8x8x384xf32, #tpu.memory_space<vmem>>, vector<1x8x384xf32>
    %236 = vector.shape_cast %235 : vector<1x8x384xf32> to vector<8x384xf32>
    %c0_96 = arith.constant 0 : index
    %c0_97 = arith.constant 0 : index
    %237 = vector.load %arg4[%c0_96, %c0_97] : memref<128x384xf32, #tpu.memory_space<vmem>>, vector<128x384xf32>
    %cst_98 = arith.constant dense<0.000000e+00> : vector<8x384xf32>
    %238 = tpu.matmul %231, %237, %cst_98 {dimension_numbers = #tpu.dot_dimension_numbers<[1], [0], [0], [1], [0, 0, 1, 1], [], []>} : vector<8x128xf32>, vector<128x384xf32>, vector<8x384xf32> -> vector<8x384xf32>
    %239 = vector.extract_strided_slice %236 {offsets = [0, 0], sizes = [8, 128], strides = [1, 1]} : vector<8x384xf32> to vector<8x128xf32>
    %240 = vector.extract_strided_slice %238 {offsets = [0, 0], sizes = [8, 128], strides = [1, 1]} : vector<8x384xf32> to vector<8x128xf32>
    %241 = arith.addf %239, %240 : vector<8x128xf32>
    %cst_99 = arith.constant 5.000000e-01 : f32
    %242 = vector.broadcast %cst_99 : f32 to vector<8x128xf32>
    %243 = arith.mulf %242, %241 : vector<8x128xf32>
    %244 = math.tanh %243 : vector<8x128xf32>
    %cst_100 = arith.constant 1.000000e+00 : f32
    %245 = vector.broadcast %cst_100 : f32 to vector<8x128xf32>
    %246 = arith.addf %244, %245 : vector<8x128xf32>
    %cst_101 = arith.constant 5.000000e-01 : f32
    %247 = vector.broadcast %cst_101 : f32 to vector<8x128xf32>
    %248 = arith.mulf %247, %246 : vector<8x128xf32>
    %249 = vector.extract_strided_slice %236 {offsets = [0, 128], sizes = [8, 128], strides = [1, 1]} : vector<8x384xf32> to vector<8x128xf32>
    %250 = vector.extract_strided_slice %238 {offsets = [0, 128], sizes = [8, 128], strides = [1, 1]} : vector<8x384xf32> to vector<8x128xf32>
    %251 = arith.addf %249, %250 : vector<8x128xf32>
    %cst_102 = arith.constant 5.000000e-01 : f32
    %252 = vector.broadcast %cst_102 : f32 to vector<8x128xf32>
    %253 = arith.mulf %252, %251 : vector<8x128xf32>
    %254 = math.tanh %253 : vector<8x128xf32>
    %cst_103 = arith.constant 1.000000e+00 : f32
    %255 = vector.broadcast %cst_103 : f32 to vector<8x128xf32>
    %256 = arith.addf %254, %255 : vector<8x128xf32>
    %cst_104 = arith.constant 5.000000e-01 : f32
    %257 = vector.broadcast %cst_104 : f32 to vector<8x128xf32>
    %258 = arith.mulf %257, %256 : vector<8x128xf32>
    %259 = vector.extract_strided_slice %236 {offsets = [0, 256], sizes = [8, 128], strides = [1, 1]} : vector<8x384xf32> to vector<8x128xf32>
    %260 = vector.extract_strided_slice %238 {offsets = [0, 256], sizes = [8, 128], strides = [1, 1]} : vector<8x384xf32> to vector<8x128xf32>
    %261 = arith.addf %260, %6 : vector<8x128xf32>
    %262 = arith.mulf %248, %261 : vector<8x128xf32>
    %263 = arith.addf %259, %262 : vector<8x128xf32>
    %264 = math.tanh %263 : vector<8x128xf32>
    %cst_105 = arith.constant 1.000000e+00 : f32
    %265 = vector.broadcast %cst_105 : f32 to vector<8x128xf32>
    %266 = arith.subf %265, %258 : vector<8x128xf32>
    %267 = arith.mulf %266, %264 : vector<8x128xf32>
    %268 = arith.mulf %258, %231 : vector<8x128xf32>
    %269 = arith.addf %267, %268 : vector<8x128xf32>
    %c6_106 = arith.constant 6 : index
    %c0_107 = arith.constant 0 : index
    %c0_108 = arith.constant 0 : index
    %270 = vector.load %arg6[%c6_106, %c0_107, %c0_108] : memref<8x8x128xf32, #tpu.memory_space<vmem>>, vector<1x8x128xf32>
    %271 = vector.shape_cast %270 : vector<1x8x128xf32> to vector<8x128xf32>
    %272 = vector.shape_cast %269 : vector<8x128xf32> to vector<1x8x128xf32>
    tpu.vector_store %arg6[%c6_106, %c0_107, %c0_108], %272 {strides = array<i32>} : memref<8x8x128xf32, #tpu.memory_space<vmem>>, vector<1x8x128xf32>,
    %c7 = arith.constant 7 : index
    %c0_109 = arith.constant 0 : index
    %c0_110 = arith.constant 0 : index
    %273 = vector.load %arg2[%c7, %c0_109, %c0_110] : memref<8x8x384xf32, #tpu.memory_space<vmem>>, vector<1x8x384xf32>
    %274 = vector.shape_cast %273 : vector<1x8x384xf32> to vector<8x384xf32>
    %c0_111 = arith.constant 0 : index
    %c0_112 = arith.constant 0 : index
    %275 = vector.load %arg4[%c0_111, %c0_112] : memref<128x384xf32, #tpu.memory_space<vmem>>, vector<128x384xf32>
    %cst_113 = arith.constant dense<0.000000e+00> : vector<8x384xf32>
    %276 = tpu.matmul %269, %275, %cst_113 {dimension_numbers = #tpu.dot_dimension_numbers<[1], [0], [0], [1], [0, 0, 1, 1], [], []>} : vector<8x128xf32>, vector<128x384xf32>, vector<8x384xf32> -> vector<8x384xf32>
    %277 = vector.extract_strided_slice %274 {offsets = [0, 0], sizes = [8, 128], strides = [1, 1]} : vector<8x384xf32> to vector<8x128xf32>
    %278 = vector.extract_strided_slice %276 {offsets = [0, 0], sizes = [8, 128], strides = [1, 1]} : vector<8x384xf32> to vector<8x128xf32>
    %279 = arith.addf %277, %278 : vector<8x128xf32>
    %cst_114 = arith.constant 5.000000e-01 : f32
    %280 = vector.broadcast %cst_114 : f32 to vector<8x128xf32>
    %281 = arith.mulf %280, %279 : vector<8x128xf32>
    %282 = math.tanh %281 : vector<8x128xf32>
    %cst_115 = arith.constant 1.000000e+00 : f32
    %283 = vector.broadcast %cst_115 : f32 to vector<8x128xf32>
    %284 = arith.addf %282, %283 : vector<8x128xf32>
    %cst_116 = arith.constant 5.000000e-01 : f32
    %285 = vector.broadcast %cst_116 : f32 to vector<8x128xf32>
    %286 = arith.mulf %285, %284 : vector<8x128xf32>
    %287 = vector.extract_strided_slice %274 {offsets = [0, 128], sizes = [8, 128], strides = [1, 1]} : vector<8x384xf32> to vector<8x128xf32>
    %288 = vector.extract_strided_slice %276 {offsets = [0, 128], sizes = [8, 128], strides = [1, 1]} : vector<8x384xf32> to vector<8x128xf32>
    %289 = arith.addf %287, %288 : vector<8x128xf32>
    %cst_117 = arith.constant 5.000000e-01 : f32
    %290 = vector.broadcast %cst_117 : f32 to vector<8x128xf32>
    %291 = arith.mulf %290, %289 : vector<8x128xf32>
    %292 = math.tanh %291 : vector<8x128xf32>
    %cst_118 = arith.constant 1.000000e+00 : f32
    %293 = vector.broadcast %cst_118 : f32 to vector<8x128xf32>
    %294 = arith.addf %292, %293 : vector<8x128xf32>
    %cst_119 = arith.constant 5.000000e-01 : f32
    %295 = vector.broadcast %cst_119 : f32 to vector<8x128xf32>
    %296 = arith.mulf %295, %294 : vector<8x128xf32>
    %297 = vector.extract_strided_slice %274 {offsets = [0, 256], sizes = [8, 128], strides = [1, 1]} : vector<8x384xf32> to vector<8x128xf32>
    %298 = vector.extract_strided_slice %276 {offsets = [0, 256], sizes = [8, 128], strides = [1, 1]} : vector<8x384xf32> to vector<8x128xf32>
    %299 = arith.addf %298, %6 : vector<8x128xf32>
    %300 = arith.mulf %286, %299 : vector<8x128xf32>
    %301 = arith.addf %297, %300 : vector<8x128xf32>
    %302 = math.tanh %301 : vector<8x128xf32>
    %cst_120 = arith.constant 1.000000e+00 : f32
    %303 = vector.broadcast %cst_120 : f32 to vector<8x128xf32>
    %304 = arith.subf %303, %296 : vector<8x128xf32>
    %305 = arith.mulf %304, %302 : vector<8x128xf32>
    %306 = arith.mulf %296, %269 : vector<8x128xf32>
    %307 = arith.addf %305, %306 : vector<8x128xf32>
    %c7_121 = arith.constant 7 : index
    %c0_122 = arith.constant 0 : index
    %c0_123 = arith.constant 0 : index
    %308 = vector.load %arg6[%c7_121, %c0_122, %c0_123] : memref<8x8x128xf32, #tpu.memory_space<vmem>>, vector<1x8x128xf32>
    %309 = vector.shape_cast %308 : vector<1x8x128xf32> to vector<8x128xf32>
    %310 = vector.shape_cast %307 : vector<8x128xf32> to vector<1x8x128xf32>
    tpu.vector_store %arg6[%c7_121, %c0_122, %c0_123], %310 {strides = array<i32>} : memref<8x8x128xf32, #tpu.memory_space<vmem>>, vector<1x8x128xf32>,
    %c0_124 = arith.constant 0 : index
    %c0_125 = arith.constant 0 : index
    %311 = vector.load %arg7[%c0_124, %c0_125] : memref<8x128xf32, #tpu.memory_space<vmem>>, vector<8x128xf32>
    tpu.vector_store %arg7[%c0_124, %c0_125], %307 {strides = array<i32>} : memref<8x128xf32, #tpu.memory_space<vmem>>, vector<8x128xf32>,
    return
  }
  func.func @transform_0(%arg0: i32, %arg1: i32) -> (i32, i32, i32) {
    %c0_i32 = arith.constant 0 : i32
    %c0_i32_0 = arith.constant 0 : i32
    return %arg1, %arg0, %c0_i32 : i32, i32, i32
  }
  func.func @transform_1(%arg0: i32, %arg1: i32) -> (i32, i32) {
    %c0_i32 = arith.constant 0 : i32
    %c0_i32_0 = arith.constant 0 : i32
    return %arg0, %c0_i32 : i32, i32
  }
  func.func @transform_2(%arg0: i32, %arg1: i32) -> (i32, i32) {
    %c0_i32 = arith.constant 0 : i32
    %c0_i32_0 = arith.constant 0 : i32
    %c0_i32_1 = arith.constant 0 : i32
    return %c0_i32, %c0_i32_0 : i32, i32
  }
  func.func @transform_3(%arg0: i32, %arg1: i32) -> (i32, i32) {
    %c0_i32 = arith.constant 0 : i32
    %c0_i32_0 = arith.constant 0 : i32
    %c0_i32_1 = arith.constant 0 : i32
    return %c0_i32, %c0_i32_0 : i32, i32
  }
  func.func @transform_4(%arg0: i32, %arg1: i32) -> (i32, i32, i32) {
    %c0_i32 = arith.constant 0 : i32
    %c0_i32_0 = arith.constant 0 : i32
    return %arg1, %arg0, %c0_i32 : i32, i32, i32
  }
  func.func @transform_5(%arg0: i32, %arg1: i32) -> (i32, i32) {
    %c0_i32 = arith.constant 0 : i32
    %c0_i32_0 = arith.constant 0 : i32
    return %arg0, %c0_i32 : i32, i32
  }
}

</mosaic_0001>

<bundles_post_ra>
// kernel: conditional_decoder_forward.5
= control target key start
LH: loop header
LB: loop body
LE: loop exit
PB: predicated region body
PF: predicated region fallthrough
CT: control target
= control target key end

     0   :  { %s263_s1 = inlined_call_operand.vmem [shape: f32[128,128], index: 1, kind: input, shape index: {}]   ;;  %s264_s2 = inlined_call_operand.vmem [shape: f32[1,128], index: 2, kind: input, shape index: {}]   ;;  %s265_s0 = inlined_call_operand.vmem [shape: f32[64,128], index: 0, kind: input, shape index: {}]   ;;  %s266_s3 = inlined_call_operand.vmem [shape: f32[64,128], index: 3, kind: output, shape index: {}]  }
   0x1   :  { %v37_v0 = vld [vmem:[%s263_s1 + $0x78] sm:$0xff]  ;;  %v36_v1 = vld [vmem:[%s263_s1 + $0x70] sm:$0xff]  ;;  %v35_v2 = vld [vmem:[%s263_s1 + $0x68] sm:$0xff] }
   0x2   :  { %96 = vmatpush.msra.mxu2 %v37_v0  ;;  %97 = vmatpush.msra.mxu3 %v37_v0  ;;  %v34_v3 = vld [vmem:[%s263_s1 + $0x60] sm:$0xff]  ;;  %v33_v4 = vld [vmem:[%s263_s1 + $0x58] sm:$0xff]  ;;  %v32_v5 = vld [vmem:[%s263_s1 + $0x50] sm:$0xff] }
   0x3   :  { %42 = vmatpush.msra.mxu0 %v37_v0  ;;  %95 = vmatpush.msra.mxu1 %v37_v0  ;;  %v31_v6 = vld [vmem:[%s263_s1 + $0x48] sm:$0xff]  ;;  %v30_v7 = vld [vmem:[%s263_s1 + $0x40] sm:$0xff]  ;;  %v29_v8 = vld [vmem:[%s263_s1 + $0x38] sm:$0xff] }
   0x4   :  { %99 = vmatpush.msra.mxu2 %v36_v1  ;;  %100 = vmatpush.msra.mxu3 %v36_v1  ;;  %v28_v9 = vld [vmem:[%s263_s1 + $0x30] sm:$0xff]  ;;  %v27_v10 = vld [vmem:[%s263_s1 + $0x28] sm:$0xff]  ;;  %v26_v11 = vld [vmem:[%s263_s1 + $0x20] sm:$0xff] }
   0x5   :  { %43 = vmatpush.msra.mxu0 %v36_v1  ;;  %98 = vmatpush.msra.mxu1 %v36_v1  ;;  %v25_v12 = vld [vmem:[%s263_s1 + $0x18] sm:$0xff]  ;;  %v24_v13 = vld [vmem:[%s263_s1 + $0x10] sm:$0xff]  ;;  %v23_v14 = vld [vmem:[%s263_s1 + $0x8] sm:$0xff] }
   0x6   :  { %102 = vmatpush.msra.mxu2 %v35_v2  ;;  %103 = vmatpush.msra.mxu3 %v35_v2  ;;  %v22_v15 = vld [vmem:[%s263_s1] sm:$0xff]  ;;  %v20_v17 = vld [vmem:[%s265_s0 + $0x30] sm:$0xff]  ;;  %v19_v20 = vld [vmem:[%s265_s0 + $0x28] sm:$0xff] }
   0x7   :  { %44 = vmatpush.msra.mxu0 %v35_v2  ;;  %101 = vmatpush.msra.mxu1 %v35_v2  ;;  %v18_v16 = vld [vmem:[%s265_s0 + $0x20] sm:$0xff]  ;;  %v16_v19 = vld [vmem:[%s265_s0 + $0x10] sm:$0xff]  ;;  %v21_v21 = vld [vmem:[%s265_s0 + $0x38] sm:$0xff] }
   0x8   :  { %105 = vmatpush.msra.mxu2 %v34_v3  ;;  %106 = vmatpush.msra.mxu3 %v34_v3  ;;  %v14_v18 = vld [vmem:[%s265_s0] sm:$0xff]  ;;  %v15_v22 = vld [vmem:[%s265_s0 + $0x8] sm:$0xff]  ;;  %v17_v23 = vld [vmem:[%s265_s0 + $0x18] sm:$0xff] }
   0x9   :  { %45 = vmatpush.msra.mxu0 %v34_v3  ;;  %104 = vmatpush.msra.mxu1 %v34_v3  ;;  %v143_v24 = vld [vmem:[%s264_s2] ss:$0 sm:$0xff] }
   0xa   :  { %108 = vmatpush.msra.mxu2 %v33_v4  ;;  %109 = vmatpush.msra.mxu3 %v33_v4 }
   0xb   :  { %46 = vmatpush.msra.mxu0 %v33_v4  ;;  %107 = vmatpush.msra.mxu1 %v33_v4 }
   0xc   :  { %111 = vmatpush.msra.mxu2 %v32_v5  ;;  %112 = vmatpush.msra.mxu3 %v32_v5 }
   0xd   :  { %47 = vmatpush.msra.mxu0 %v32_v5  ;;  %110 = vmatpush.msra.mxu1 %v32_v5 }
   0xe   :  { %114 = vmatpush.msra.mxu2 %v31_v6  ;;  %115 = vmatpush.msra.mxu3 %v31_v6 }
   0xf   :  { %48 = vmatpush.msra.mxu0 %v31_v6  ;;  %113 = vmatpush.msra.mxu1 %v31_v6 }
  0x10   :  { %117 = vmatpush.msra.mxu2 %v30_v7  ;;  %118 = vmatpush.msra.mxu3 %v30_v7 }
  0x11   :  { %49 = vmatpush.msra.mxu0 %v30_v7  ;;  %116 = vmatpush.msra.mxu1 %v30_v7 }
  0x12   :  { %120 = vmatpush.msra.mxu2 %v29_v8  ;;  %121 = vmatpush.msra.mxu3 %v29_v8 }
  0x13   :  { %50 = vmatpush.msra.mxu0 %v29_v8  ;;  %119 = vmatpush.msra.mxu1 %v29_v8 }
  0x14   :  { %123 = vmatpush.msra.mxu2 %v28_v9  ;;  %124 = vmatpush.msra.mxu3 %v28_v9 }
  0x15   :  { %51 = vmatpush.msra.mxu0 %v28_v9  ;;  %122 = vmatpush.msra.mxu1 %v28_v9 }
  0x16   :  { %126 = vmatpush.msra.mxu2 %v27_v10  ;;  %127 = vmatpush.msra.mxu3 %v27_v10 }
  0x17   :  { %52 = vmatpush.msra.mxu0 %v27_v10  ;;  %125 = vmatpush.msra.mxu1 %v27_v10 }
  0x18   :  { %129 = vmatpush.msra.mxu2 %v26_v11  ;;  %130 = vmatpush.msra.mxu3 %v26_v11 }
  0x19   :  { %53 = vmatpush.msra.mxu0 %v26_v11  ;;  %128 = vmatpush.msra.mxu1 %v26_v11 }
  0x1a   :  { %132 = vmatpush.msra.mxu2 %v25_v12  ;;  %133 = vmatpush.msra.mxu3 %v25_v12 }
  0x1b   :  { %54 = vmatpush.msra.mxu0 %v25_v12  ;;  %131 = vmatpush.msra.mxu1 %v25_v12 }
  0x1c   :  { %135 = vmatpush.msra.mxu2 %v24_v13  ;;  %136 = vmatpush.msra.mxu3 %v24_v13 }
  0x1d   :  { %55 = vmatpush.msra.mxu0 %v24_v13  ;;  %134 = vmatpush.msra.mxu1 %v24_v13 }
  0x1e   :  { %138 = vmatpush.msra.mxu2 %v23_v14  ;;  %139 = vmatpush.msra.mxu3 %v23_v14 }
  0x1f   :  { %56 = vmatpush.msra.mxu0 %v23_v14  ;;  %137 = vmatpush.msra.mxu1 %v23_v14 }
  0x20   :  { %141 = vmatpush.msra.mxu2 %v22_v15  ;;  %142 = vmatpush.msra.mxu3 %v22_v15 }
  0x21   :  { %70 = vmatmul.f32.vlgmr.msra.gmra.mxu2 %v18_v16  ;;  %76 = vmatmul.f32.vlgmr.msra.gmra.mxu3 %v20_v17 }
  0x22   :  { %57 = vmatpush.msra.mxu0 %v22_v15  ;;  %140 = vmatpush.msra.mxu1 %v22_v15 }
  0x23   :  { %58 = vmatmul.f32.vlgmr.msra.gmra.mxu0 %v14_v18  ;;  %64 = vmatmul.f32.vlgmr.msra.gmra.mxu1 %v16_v19 }
  0x29   :  { %73 = vmatmul.f32.gmra.mxu2 %v19_v20  ;;  %79 = vmatmul.f32.gmra.mxu3 %v21_v21 }
  0x2b   :  { %61 = vmatmul.f32.gmra.mxu0 %v15_v22  ;;  %67 = vmatmul.f32.gmra.mxu1 %v17_v23 }
  0xa0   :  { %v59_v25 = vpop.f32.mrf.mxu0  ;;  %v65_v26 = vpop.f32.mrf.mxu1 }
  0xa1   :  { %v60_v27 = vadd.f32 %v143_v24, %v59_v25  ;;  %v66_v28 = vadd.f32 %v143_v24, %v65_v26 }
  0xa3   :  { %83 = vst [vmem:[%s266_s3] sm:$0xff] %v60_v27 }
  0xa4   :  { %85 = vst [vmem:[%s266_s3 + $0x10] sm:$0xff] %v66_v28  ;;  %v71_v29 = vpop.f32.mrf.mxu2  ;;  %v77_v30 = vpop.f32.mrf.mxu3 }
  0xa5   :  { %v72_v31 = vadd.f32 %v143_v24, %v71_v29  ;;  %v78_v32 = vadd.f32 %v143_v24, %v77_v30 }
  0xa7   :  { %87 = vst [vmem:[%s266_s3 + $0x20] sm:$0xff] %v72_v31 }
  0xa8   :  { %89 = vst [vmem:[%s266_s3 + $0x30] sm:$0xff] %v78_v32  ;;  %v62_v33 = vpop.f32.mrf.mxu0  ;;  %v68_v34 = vpop.f32.mrf.mxu1 }
  0xa9   :  { %v63_v35 = vadd.f32 %v143_v24, %v62_v33  ;;  %v69_v36 = vadd.f32 %v143_v24, %v68_v34 }
  0xab   :  { %84 = vst [vmem:[%s266_s3 + $0x8] sm:$0xff] %v63_v35 }
  0xac   :  { %86 = vst [vmem:[%s266_s3 + $0x18] sm:$0xff] %v69_v36  ;;  %v74_v37 = vpop.f32.mrf.mxu2  ;;  %v80_v38 = vpop.f32.mrf.mxu3 }
  0xad   :  { %v75_v39 = vadd.f32 %v143_v24, %v74_v37  ;;  %v81_v40 = vadd.f32 %v143_v24, %v80_v38 }
  0xaf   :  { %88 = vst [vmem:[%s266_s3 + $0x28] sm:$0xff] %v75_v39 }
  0xb0   :  { %90 = vst [vmem:[%s266_s3 + $0x38] sm:$0xff] %v81_v40 }

// kernel: conditional_decoder_forward.3
= control target key start
LH: loop header
LB: loop body
LE: loop exit
PB: predicated region body
PF: predicated region fallthrough
CT: control target
= control target key end

     0   :  { %vm48_vm0 = vcmask 392192   ;;  %s493_s1 = inlined_call_operand.vmem [shape: f32[48,384], index: 1, kind: input, shape index: {}]   ;;  %s494_s0 = inlined_call_operand.vmem [shape: f32[64,48], index: 0, kind: input, shape index: {}]   ;;  %s495_s2 = inlined_call_operand.vmem [shape: f32[1,384], index: 2, kind: input, shape index: {}]   ;;  %s496_s3 = inlined_call_operand.vmem [shape: f32[64,384], index: 3, kind: output, shape index: {}]  }
   0x1   :  { %v37_v0 = vld [vmem:[%s493_s1 + $0x78] sm:$0xff]  ;;  %v39_v1 = vld [vmem:[%s493_s1 + $0x88] sm:$0xff]  ;;  %v34_v2 = vld [vmem:[%s493_s1 + $0x60] sm:$0xff] }
   0x2   :  { %248 = vmatpush.msra.mxu3 %v37_v0  ;;  %165 = vmatpush.msra.mxu2 %v39_v1  ;;  %v36_v3 = vld [vmem:[%s493_s1 + $0x70] sm:$0xff]  ;;  %v31_v4 = vld [vmem:[%s493_s1 + $0x48] sm:$0xff]  ;;  %v33_v5 = vld [vmem:[%s493_s1 + $0x58] sm:$0xff] }
   0x3   :  { %83 = vmatpush.msra.mxu0 %v37_v0  ;;  %v38_v6 = vld [vmem:[%s493_s1 + $0x80] sm:$0xff]  ;;  %v35_v7 = vld [vmem:[%s493_s1 + $0x68] sm:$0xff]  ;;  %v28_v8 = vld [vmem:[%s493_s1 + $0x30] sm:$0xff] }
   0x4   :  { %249 = vmatpush.msra.mxu3 %v34_v2  ;;  %166 = vmatpush.msra.mxu2 %v36_v3  ;;  %v30_v9 = vld [vmem:[%s493_s1 + $0x40] sm:$0xff]  ;;  %v32_v10 = vld [vmem:[%s493_s1 + $0x50] sm:$0xff]  ;;  %v25_v11 = vld [vmem:[%s493_s1 + $0x18] sm:$0xff] }
   0x5   :  { %124 = vmatpush.msra.mxu1 %v38_v6  ;;  %84 = vmatpush.msra.mxu0 %v34_v2  ;;  %v27_v12 = vld [vmem:[%s493_s1 + $0x28] sm:$0xff]  ;;  %v29_v13 = vld [vmem:[%s493_s1 + $0x38] sm:$0xff]  ;;  %v22_v14 = vld [vmem:[%s493_s1] sm:$0xff] }
   0x6   :  { %250 = vmatpush.msra.mxu3 %v31_v4  ;;  %167 = vmatpush.msra.mxu2 %v33_v5  ;;  %v24_v15 = vld [vmem:[%s493_s1 + $0x10] sm:$0xff]  ;;  %v14_v17 = vld [vmem:[%s494_s0] sm:$0xff]  ;;  %v23_v19 = vld [vmem:[%s493_s1 + $0x8] sm:$0xff] }
   0x7   :  { %125 = vmatpush.msra.mxu1 %v35_v7  ;;  %85 = vmatpush.msra.mxu0 %v31_v4  ;;  %v20_v16 = vld [vmem:[%s494_s0 + $0x30] sm:$0xff]  ;;  %v26_v18 = vld [vmem:[%s493_s1 + $0x20] sm:$0xff]  ;;  %v21_v20 = vld [vmem:[%s494_s0 + $0x38] sm:$0xff] }
   0x8   :  { %251 = vmatpush.msra.mxu3 %v28_v8  ;;  %168 = vmatpush.msra.mxu2 %v30_v9  ;;  %v15_v21 = vld [vmem:[%s494_s0 + $0x8] sm:$0xff]  ;;  %v16_v22 = vld [vmem:[%s494_s0 + $0x10] sm:$0xff]  ;;  %v17_v23 = vld [vmem:[%s494_s0 + $0x18] sm:$0xff] }
   0x9   :  { %126 = vmatpush.msra.mxu1 %v32_v10  ;;  %86 = vmatpush.msra.mxu0 %v28_v8  ;;  %v18_v24 = vld [vmem:[%s494_s0 + $0x20] sm:$0xff]  ;;  %v19_v25 = vld [vmem:[%s494_s0 + $0x28] sm:$0xff] }
   0xa   :  { %252 = vmatpush.msra.mxu3 %v25_v11  ;;  %169 = vmatpush.msra.mxu2 %v27_v12  ;;  %v40_v26 = vld [vmem:[%s495_s2] sm:$0x7] }
   0xb   :  { %127 = vmatpush.msra.mxu1 %v29_v13  ;;  %87 = vmatpush.msra.mxu0 %v25_v11  ;;  %v391_v27 = vperm.slane %v40_v26, 0  ;;  %v393_v28 = vperm.slane %v40_v26, 1  ;;  %v395_v29 = vperm.slane %v40_v26, 2 }
   0xc   :  { %253 = vmatpush.msra.mxu3 %v22_v14  ;;  %170 = vmatpush.msra.mxu2 %v24_v15 }
   0xd   :  { %230 = vmatmul.msk.f32.vlgmr.msra.gmra.mxu3 %vm48_vm0, %v20_v16  ;;  %240 = vmatmul.msk.f32.vlgmr.msra.gmra.mxu2 %vm48_vm0, %v14_v17 }
   0xe   :  { %254 = vmatpush.msrb.mxu3 %v38_v6  ;;  %128 = vmatpush.msra.mxu1 %v26_v18 }
   0xf   :  { %88 = vmatpush.msra.mxu0 %v22_v14 }
  0x10   :  { %255 = vmatpush.msrb.mxu3 %v35_v7  ;;  %129 = vmatpush.msra.mxu1 %v23_v19 }
  0x11   :  { %224 = vmatmul.msk.f32.vlgmr.msra.gmra.mxu0 %vm48_vm0, %v14_v17  ;;  %232 = vmatmul.msk.f32.vlgmr.msra.gmra.mxu1 %vm48_vm0, %v14_v17 }
  0x12   :  { %256 = vmatpush.msrb.mxu3 %v32_v10 }
  0x14   :  { %257 = vmatpush.msrb.mxu3 %v29_v13 }
  0x15   :  { %231 = vmatmul.msk.f32.gmra.mxu3 %vm48_vm0, %v21_v20  ;;  %241 = vmatmul.msk.f32.gmra.mxu2 %vm48_vm0, %v15_v21 }
  0x16   :  { %258 = vmatpush.msrb.mxu3 %v26_v18 }
  0x18   :  { %259 = vmatpush.msrb.mxu3 %v23_v19 }
  0x19   :  { %225 = vmatmul.msk.f32.gmra.mxu0 %vm48_vm0, %v15_v21  ;;  %233 = vmatmul.msk.f32.gmra.mxu1 %vm48_vm0, %v15_v21 }
  0x1a   :  { %260 = vmatpush.msra.mxu3 %v39_v1 }
  0x1c   :  { %261 = vmatpush.msra.mxu3 %v36_v3 }
  0x1d   :  { %238 = vmatmul.msk.f32.vlgmr.msrb.gmra.mxu3 %vm48_vm0, %v20_v16  ;;  %242 = vmatmul.msk.f32.gmra.mxu2 %vm48_vm0, %v16_v22 }
  0x1e   :  { %262 = vmatpush.msra.mxu3 %v33_v5 }
  0x20   :  { %263 = vmatpush.msra.mxu3 %v30_v9 }
  0x21   :  { %226 = vmatmul.msk.f32.gmra.mxu0 %vm48_vm0, %v16_v22  ;;  %234 = vmatmul.msk.f32.gmra.mxu1 %vm48_vm0, %v16_v22 }
  0x22   :  { %264 = vmatpush.msra.mxu3 %v27_v12 }
  0x24   :  { %265 = vmatpush.msra.mxu3 %v24_v15 }
  0x25   :  { %239 = vmatmul.msk.f32.gmra.mxu3 %vm48_vm0, %v21_v20  ;;  %243 = vmatmul.msk.f32.gmra.mxu2 %vm48_vm0, %v17_v23 }
  0x29   :  { %227 = vmatmul.msk.f32.gmra.mxu0 %vm48_vm0, %v17_v23  ;;  %235 = vmatmul.msk.f32.gmra.mxu1 %vm48_vm0, %v17_v23 }
  0x2d   :  { %244 = vmatmul.msk.f32.gmra.mxu2 %vm48_vm0, %v18_v24  ;;  %246 = vmatmul.msk.f32.vlgmr.msra.gmra.mxu3 %vm48_vm0, %v20_v16 }
  0x31   :  { %228 = vmatmul.msk.f32.gmra.mxu0 %vm48_vm0, %v18_v24  ;;  %236 = vmatmul.msk.f32.gmra.mxu1 %vm48_vm0, %v18_v24 }
  0x35   :  { %245 = vmatmul.msk.f32.gmra.mxu2 %vm48_vm0, %v19_v25  ;;  %247 = vmatmul.msk.f32.gmra.mxu3 %vm48_vm0, %v21_v20 }
  0x39   :  { %229 = vmatmul.msk.f32.gmra.mxu0 %vm48_vm0, %v19_v25  ;;  %237 = vmatmul.msk.f32.gmra.mxu1 %vm48_vm0, %v19_v25 }
  0x8e   :  { %v90_v30 = vpop.f32.mrf.mxu0  ;;  %v131_v31 = vpop.f32.mrf.mxu1 }
  0x8f   :  { %v91_v32 = vadd.f32 %v90_v30, %v391_v27  ;;  %v132_v33 = vadd.f32 %v131_v31, %v393_v28 }
  0x90   :  { %v108_v34 = vpop.f32.mrf.mxu3  ;;  %v172_v35 = vpop.f32.mrf.mxu2 }
  0x91   :  { %196 = vst [vmem:[%s496_s3] sm:$0xff] %v91_v32  ;;  %v109_v36 = vadd.f32 %v108_v34, %v391_v27  ;;  %v173_v37 = vadd.f32 %v172_v35, %v395_v29 }
  0x92   :  { %197 = vst [vmem:[%s496_s3 + $0x8] sm:$0xff] %v132_v33 }
  0x93   :  { %214 = vst [vmem:[%s496_s3 + $0x90] sm:$0xff] %v109_v36 }
  0x94   :  { %198 = vst [vmem:[%s496_s3 + $0x10] sm:$0xff] %v173_v37 }
  0x96   :  { %v93_v38 = vpop.f32.mrf.mxu0  ;;  %v134_v39 = vpop.f32.mrf.mxu1 }
  0x97   :  { %v94_v40 = vadd.f32 %v93_v38, %v391_v27  ;;  %v135_v41 = vadd.f32 %v134_v39, %v393_v28 }
  0x98   :  { %v111_v42 = vpop.f32.mrf.mxu3  ;;  %v175_v43 = vpop.f32.mrf.mxu2 }
  0x99   :  { %199 = vst [vmem:[%s496_s3 + $0x18] sm:$0xff] %v94_v40  ;;  %v112_v44 = vadd.f32 %v111_v42, %v391_v27  ;;  %v176_v45 = vadd.f32 %v175_v43, %v395_v29 }
  0x9a   :  { %200 = vst [vmem:[%s496_s3 + $0x20] sm:$0xff] %v135_v41 }
  0x9b   :  { %217 = vst [vmem:[%s496_s3 + $0xa8] sm:$0xff] %v112_v44 }
  0x9c   :  { %201 = vst [vmem:[%s496_s3 + $0x28] sm:$0xff] %v176_v45 }
  0x9e   :  { %v96_v46 = vpop.f32.mrf.mxu0  ;;  %v137_v47 = vpop.f32.mrf.mxu1 }
  0x9f   :  { %v97_v48 = vadd.f32 %v96_v46, %v391_v27  ;;  %v138_v49 = vadd.f32 %v137_v47, %v393_v28 }
  0xa0   :  { %v149_v50 = vpop.f32.mrf.mxu3  ;;  %v178_v51 = vpop.f32.mrf.mxu2 }
  0xa1   :  { %202 = vst [vmem:[%s496_s3 + $0x30] sm:$0xff] %v97_v48  ;;  %v150_v52 = vadd.f32 %v149_v50, %v393_v28  ;;  %v179_v53 = vadd.f32 %v178_v51, %v395_v29 }
  0xa2   :  { %203 = vst [vmem:[%s496_s3 + $0x38] sm:$0xff] %v138_v49 }
  0xa3   :  { %215 = vst [vmem:[%s496_s3 + $0x98] sm:$0xff] %v150_v52 }
  0xa4   :  { %204 = vst [vmem:[%s496_s3 + $0x40] sm:$0xff] %v179_v53 }
  0xa6   :  { %v99_v54 = vpop.f32.mrf.mxu0  ;;  %v140_v55 = vpop.f32.mrf.mxu1 }
  0xa7   :  { %v100_v56 = vadd.f32 %v99_v54, %v391_v27  ;;  %v141_v57 = vadd.f32 %v140_v55, %v393_v28 }
  0xa8   :  { %v152_v58 = vpop.f32.mrf.mxu3  ;;  %v181_v59 = vpop.f32.mrf.mxu2 }
  0xa9   :  { %205 = vst [vmem:[%s496_s3 + $0x48] sm:$0xff] %v100_v56  ;;  %v153_v60 = vadd.f32 %v152_v58, %v393_v28  ;;  %v182_v61 = vadd.f32 %v181_v59, %v395_v29 }
  0xaa   :  { %206 = vst [vmem:[%s496_s3 + $0x50] sm:$0xff] %v141_v57 }
  0xab   :  { %218 = vst [vmem:[%s496_s3 + $0xb0] sm:$0xff] %v153_v60 }
  0xac   :  { %207 = vst [vmem:[%s496_s3 + $0x58] sm:$0xff] %v182_v61 }
  0xae   :  { %v102_v62 = vpop.f32.mrf.mxu0  ;;  %v143_v63 = vpop.f32.mrf.mxu1 }
  0xaf   :  { %v103_v0 = vadd.f32 %v102_v62, %v391_v27  ;;  %v144_v1 = vadd.f32 %v143_v63, %v393_v28 }
  0xb0   :  { %v184_v2 = vpop.f32.mrf.mxu2  ;;  %v190_v3 = vpop.f32.mrf.mxu3 }
  0xb1   :  { %208 = vst [vmem:[%s496_s3 + $0x60] sm:$0xff] %v103_v0  ;;  %v185_v4 = vadd.f32 %v184_v2, %v395_v29  ;;  %v191_v5 = vadd.f32 %v190_v3, %v395_v29 }
  0xb2   :  { %209 = vst [vmem:[%s496_s3 + $0x68] sm:$0xff] %v144_v1 }
  0xb3   :  { %210 = vst [vmem:[%s496_s3 + $0x70] sm:$0xff] %v185_v4 }
  0xb4   :  { %216 = vst [vmem:[%s496_s3 + $0xa0] sm:$0xff] %v191_v5 }
  0xb6   :  { %v105_v6 = vpop.f32.mrf.mxu0  ;;  %v146_v7 = vpop.f32.mrf.mxu1 }
  0xb7   :  { %v106_v8 = vadd.f32 %v105_v6, %v391_v27  ;;  %v147_v9 = vadd.f32 %v146_v7, %v393_v28 }
  0xb8   :  { %v187_v10 = vpop.f32.mrf.mxu2  ;;  %v193_v11 = vpop.f32.mrf.mxu3 }
  0xb9   :  { %211 = vst [vmem:[%s496_s3 + $0x78] sm:$0xff] %v106_v8  ;;  %v188_v12 = vadd.f32 %v187_v10, %v395_v29  ;;  %v194_v13 = vadd.f32 %v193_v11, %v395_v29 }
  0xba   :  { %212 = vst [vmem:[%s496_s3 + $0x80] sm:$0xff] %v147_v9 }
  0xbb   :  { %213 = vst [vmem:[%s496_s3 + $0x88] sm:$0xff] %v188_v12 }
  0xbc   :  { %219 = vst [vmem:[%s496_s3 + $0xb8] sm:$0xff] %v194_v13 }

// kernel: conditional_decoder_forward.4
= control target key start
LH: loop header
LB: loop body
LE: loop exit
PB: predicated region body
PF: predicated region fallthrough
CT: control target
= control target key end

     0   :  { %s2199_s2 = inlined_call_operand.vmem [shape: f32[128,384], index: 2, kind: input, shape index: {}]   ;;  %s2200_s1 = inlined_call_operand.vmem [shape: f32[8,128], index: 1, kind: input, shape index: {}]   ;;  %s2201_s3 = inlined_call_operand.vmem [shape: f32[1,128], index: 3, kind: input, shape index: {}]   ;;  %s2202_s0 = inlined_call_operand.vmem [shape: f32[8,8,384], index: 0, kind: input, shape index: {}]   ;;  %s2203_s4 = inlined_call_operand.vmem [shape: f32[8,8,128], index: 4, kind: output, shape index: {0}]   ;;  %s2204_s5 = inlined_call_operand.vmem [shape: f32[8,128], index: 5, kind: output, shape index: {1}]  }
   0x1   :  { %v1203_v0 = vld [vmem:[%s2199_s2 + $0x168] sm:$0xff]  ;;  %v1208_v1 = vld [vmem:[%s2199_s2 + $0x150] sm:$0xff]  ;;  %v1214_v2 = vld [vmem:[%s2199_s2 + $0x178] sm:$0xff] }
   0x2   :  { %81 = vmatpush.msra.mxu0 %v1203_v0  ;;  %212 = vmatpush.msra.mxu3 %v1203_v0  ;;  %v1220_v3 = vld [vmem:[%s2199_s2 + $0x138] sm:$0xff]  ;;  %v1226_v4 = vld [vmem:[%s2199_s2 + $0x170] sm:$0xff]  ;;  %v1231_v5 = vld [vmem:[%s2199_s2 + $0x160] sm:$0xff] }
   0x3   :  { %121 = vmatpush.msra.mxu2 %v1214_v2  ;;  %101 = vmatpush.msra.mxu1 %v1226_v4  ;;  %v1238_v6 = vld [vmem:[%s2199_s2 + $0x158] sm:$0xff]  ;;  %v1243_v7 = vld [vmem:[%s2199_s2 + $0x148] sm:$0xff]  ;;  %v1248_v8 = vld [vmem:[%s2199_s2 + $0x120] sm:$0xff] }
   0x4   :  { %82 = vmatpush.msra.mxu0 %v1208_v1  ;;  %v1254_v9 = vld [vmem:[%s2199_s2 + $0x140] sm:$0xff]  ;;  %213 = vmatpush.msra.mxu3 %v1208_v1  ;;  %v1262_v10 = vld [vmem:[%s2199_s2 + $0x130] sm:$0xff]  ;;  %v1267_v11 = vld [vmem:[%s2199_s2 + $0x108] sm:$0xff] }
   0x5   :  { %122 = vmatpush.msra.mxu2 %v1231_v5  ;;  %102 = vmatpush.msra.mxu1 %v1238_v6  ;;  %v1273_v12 = vld [vmem:[%s2199_s2 + $0x128] sm:$0xff]  ;;  %v1281_v13 = vld [vmem:[%s2199_s2 + $0x118] sm:$0xff]  ;;  %v1286_v14 = vld [vmem:[%s2199_s2 + $0xf0] sm:$0xff] }
   0x6   :  { %83 = vmatpush.msra.mxu0 %v1220_v3  ;;  %214 = vmatpush.msra.mxu3 %v1220_v3  ;;  %v1292_v15 = vld [vmem:[%s2199_s2 + $0x110] sm:$0xff]  ;;  %v1300_v16 = vld [vmem:[%s2199_s2 + $0x100] sm:$0xff]  ;;  %v1305_v17 = vld [vmem:[%s2199_s2 + $0xd8] sm:$0xff] }
   0x7   :  { %123 = vmatpush.msra.mxu2 %v1243_v7  ;;  %103 = vmatpush.msra.mxu1 %v1254_v9  ;;  %v1311_v18 = vld [vmem:[%s2199_s2 + $0xf8] sm:$0xff]  ;;  %v1319_v19 = vld [vmem:[%s2199_s2 + $0xe8] sm:$0xff]  ;;  %v1324_v20 = vld [vmem:[%s2199_s2 + $0xc0] sm:$0xff] }
   0x8   :  { %84 = vmatpush.msra.mxu0 %v1248_v8  ;;  %215 = vmatpush.msra.mxu3 %v1248_v8  ;;  %v1330_v21 = vld [vmem:[%s2199_s2 + $0xe0] sm:$0xff]  ;;  %v1338_v22 = vld [vmem:[%s2199_s2 + $0xd0] sm:$0xff]  ;;  %v1343_v23 = vld [vmem:[%s2199_s2 + $0xa8] sm:$0xff] }
   0x9   :  { %124 = vmatpush.msra.mxu2 %v1262_v10  ;;  %104 = vmatpush.msra.mxu1 %v1273_v12  ;;  %v1349_v24 = vld [vmem:[%s2199_s2 + $0xc8] sm:$0xff]  ;;  %v1357_v25 = vld [vmem:[%s2199_s2 + $0xb8] sm:$0xff]  ;;  %v1362_v26 = vld [vmem:[%s2199_s2 + $0x90] sm:$0xff] }
   0xa   :  { %85 = vmatpush.msra.mxu0 %v1267_v11  ;;  %216 = vmatpush.msra.mxu3 %v1267_v11  ;;  %v1368_v27 = vld [vmem:[%s2199_s2 + $0xb0] sm:$0xff]  ;;  %v1376_v28 = vld [vmem:[%s2199_s2 + $0xa0] sm:$0xff]  ;;  %v1381_v29 = vld [vmem:[%s2199_s2 + $0x78] sm:$0xff] }
   0xb   :  { %125 = vmatpush.msra.mxu2 %v1281_v13  ;;  %105 = vmatpush.msra.mxu1 %v1292_v15  ;;  %v1387_v30 = vld [vmem:[%s2199_s2 + $0x98] sm:$0xff]  ;;  %v1395_v31 = vld [vmem:[%s2199_s2 + $0x88] sm:$0xff]  ;;  %v1400_v32 = vld [vmem:[%s2199_s2 + $0x60] sm:$0xff] }
   0xc   :  { %86 = vmatpush.msra.mxu0 %v1286_v14  ;;  %217 = vmatpush.msra.mxu3 %v1286_v14  ;;  %v1406_v33 = vld [vmem:[%s2199_s2 + $0x80] sm:$0xff]  ;;  %v1414_v34 = vld [vmem:[%s2199_s2 + $0x70] sm:$0xff]  ;;  %v1419_v35 = vld [vmem:[%s2199_s2 + $0x48] sm:$0xff] }
   0xd   :  { %126 = vmatpush.msra.mxu2 %v1300_v16  ;;  %106 = vmatpush.msra.mxu1 %v1311_v18  ;;  %v1425_v36 = vld [vmem:[%s2199_s2 + $0x68] sm:$0xff]  ;;  %v1433_v37 = vld [vmem:[%s2199_s2 + $0x58] sm:$0xff]  ;;  %v1438_v38 = vld [vmem:[%s2199_s2 + $0x30] sm:$0xff] }
   0xe   :  { %87 = vmatpush.msra.mxu0 %v1305_v17  ;;  %218 = vmatpush.msra.mxu3 %v1305_v17  ;;  %v1444_v39 = vld [vmem:[%s2199_s2 + $0x50] sm:$0xff]  ;;  %v1452_v40 = vld [vmem:[%s2199_s2 + $0x40] sm:$0xff]  ;;  %v1457_v41 = vld [vmem:[%s2199_s2 + $0x18] sm:$0xff] }
   0xf   :  { %127 = vmatpush.msra.mxu2 %v1319_v19  ;;  %107 = vmatpush.msra.mxu1 %v1330_v21  ;;  %v1463_v42 = vld [vmem:[%s2199_s2 + $0x38] sm:$0xff]  ;;  %v1471_v43 = vld [vmem:[%s2199_s2 + $0x28] sm:$0xff]  ;;  %v1476_v44 = vld [vmem:[%s2199_s2] sm:$0xff] }
  0x10   :  { %88 = vmatpush.msra.mxu0 %v1324_v20  ;;  %219 = vmatpush.msra.mxu3 %v1324_v20  ;;  %v1482_v45 = vld [vmem:[%s2199_s2 + $0x20] sm:$0xff]  ;;  %v1495_v47 = vld [vmem:[%s2199_s2 + $0x10] sm:$0xff]  ;;  %v1501_v48 = vld [vmem:[%s2199_s2 + $0x8] sm:$0xff] }
  0x11   :  { %128 = vmatpush.msra.mxu2 %v1338_v22  ;;  %108 = vmatpush.msra.mxu1 %v1349_v24  ;;  %v1489_v46 = vld [vmem:[%s2200_s1] sm:$0xff]  ;;  %v31_v51 = vld [vmem:[%s2202_s0 + $0x8] sm:$0xff] }
  0x12   :  { %89 = vmatpush.msra.mxu0 %v1343_v23  ;;  %220 = vmatpush.msra.mxu3 %v1343_v23  ;;  %v30_v49 = vld [vmem:[%s2202_s0] sm:$0xff] }
  0x13   :  { %129 = vmatpush.msra.mxu2 %v1357_v25  ;;  %109 = vmatpush.msra.mxu1 %v1368_v27  ;;  %v1633_v57 = vld [vmem:[%s2201_s3] ss:$0 sm:$0xff] }
  0x14   :  { %90 = vmatpush.msra.mxu0 %v1362_v26  ;;  %221 = vmatpush.msra.mxu3 %v1362_v26 }
  0x15   :  { %130 = vmatpush.msra.mxu2 %v1376_v28  ;;  %110 = vmatpush.msra.mxu1 %v1387_v30 }
  0x16   :  { %91 = vmatpush.msra.mxu0 %v1381_v29  ;;  %222 = vmatpush.msra.mxu3 %v1381_v29 }
  0x17   :  { %131 = vmatpush.msra.mxu2 %v1395_v31  ;;  %111 = vmatpush.msra.mxu1 %v1406_v33 }
  0x18   :  { %92 = vmatpush.msra.mxu0 %v1400_v32  ;;  %223 = vmatpush.msra.mxu3 %v1400_v32 }
  0x19   :  { %132 = vmatpush.msra.mxu2 %v1414_v34  ;;  %112 = vmatpush.msra.mxu1 %v1425_v36 }
  0x1a   :  { %93 = vmatpush.msra.mxu0 %v1419_v35  ;;  %224 = vmatpush.msra.mxu3 %v1419_v35 }
  0x1b   :  { %133 = vmatpush.msra.mxu2 %v1433_v37  ;;  %113 = vmatpush.msra.mxu1 %v1444_v39 }
  0x1c   :  { %94 = vmatpush.msra.mxu0 %v1438_v38  ;;  %225 = vmatpush.msra.mxu3 %v1438_v38 }
  0x1d   :  { %134 = vmatpush.msra.mxu2 %v1452_v40  ;;  %114 = vmatpush.msra.mxu1 %v1463_v42 }
  0x1e   :  { %95 = vmatpush.msra.mxu0 %v1457_v41  ;;  %226 = vmatpush.msra.mxu3 %v1457_v41 }
  0x1f   :  { %135 = vmatpush.msra.mxu2 %v1471_v43  ;;  %115 = vmatpush.msra.mxu1 %v1482_v45 }
  0x20   :  { %96 = vmatpush.msra.mxu0 %v1476_v44  ;;  %227 = vmatpush.msra.mxu3 %v1476_v44 }
  0x21   :  { %97 = vmatmul.f32.vlgmr.msra.gmra.mxu0 %v1489_v46  ;;  %136 = vmatpush.msra.mxu2 %v1495_v47 }
  0x22   :  { %137 = vmatmul.f32.vlgmr.msra.gmra.mxu2 %v1489_v46  ;;  %116 = vmatpush.msra.mxu1 %v1501_v48 }
  0x23   :  { %117 = vmatmul.f32.vlgmr.msra.gmra.mxu1 %v1489_v46  ;;  %232 = vmatpush.msrb.mxu0 %v1226_v4 }
  0x24   :  { %252 = vmatpush.msrb.mxu1 %v1214_v2  ;;  %344 = vmatpush.msrb.mxu2 %v1203_v0 }
  0x25   :  { %233 = vmatpush.msrb.mxu0 %v1238_v6  ;;  %364 = vmatpush.msrb.mxu3 %v1226_v4 }
  0x26   :  { %253 = vmatpush.msrb.mxu1 %v1231_v5  ;;  %345 = vmatpush.msrb.mxu2 %v1208_v1 }
  0x27   :  { %234 = vmatpush.msrb.mxu0 %v1254_v9  ;;  %365 = vmatpush.msrb.mxu3 %v1238_v6 }
  0x28   :  { %254 = vmatpush.msrb.mxu1 %v1243_v7  ;;  %346 = vmatpush.msrb.mxu2 %v1220_v3 }
  0x29   :  { %235 = vmatpush.msrb.mxu0 %v1273_v12  ;;  %366 = vmatpush.msrb.mxu3 %v1254_v9 }
  0x2a   :  { %255 = vmatpush.msrb.mxu1 %v1262_v10  ;;  %347 = vmatpush.msrb.mxu2 %v1248_v8 }
  0x2b   :  { %236 = vmatpush.msrb.mxu0 %v1292_v15  ;;  %367 = vmatpush.msrb.mxu3 %v1273_v12 }
  0x2c   :  { %256 = vmatpush.msrb.mxu1 %v1281_v13  ;;  %348 = vmatpush.msrb.mxu2 %v1267_v11 }
  0x2d   :  { %237 = vmatpush.msrb.mxu0 %v1311_v18  ;;  %368 = vmatpush.msrb.mxu3 %v1292_v15 }
  0x2e   :  { %257 = vmatpush.msrb.mxu1 %v1300_v16  ;;  %349 = vmatpush.msrb.mxu2 %v1286_v14 }
  0x2f   :  { %238 = vmatpush.msrb.mxu0 %v1330_v21  ;;  %369 = vmatpush.msrb.mxu3 %v1311_v18 }
  0x30   :  { %258 = vmatpush.msrb.mxu1 %v1319_v19  ;;  %350 = vmatpush.msrb.mxu2 %v1305_v17 }
  0x31   :  { %239 = vmatpush.msrb.mxu0 %v1349_v24  ;;  %370 = vmatpush.msrb.mxu3 %v1330_v21 }
  0x32   :  { %259 = vmatpush.msrb.mxu1 %v1338_v22  ;;  %351 = vmatpush.msrb.mxu2 %v1324_v20 }
  0x33   :  { %240 = vmatpush.msrb.mxu0 %v1368_v27  ;;  %371 = vmatpush.msrb.mxu3 %v1349_v24 }
  0x34   :  { %260 = vmatpush.msrb.mxu1 %v1357_v25  ;;  %352 = vmatpush.msrb.mxu2 %v1343_v23 }
  0x35   :  { %241 = vmatpush.msrb.mxu0 %v1387_v30  ;;  %372 = vmatpush.msrb.mxu3 %v1368_v27 }
  0x36   :  { %261 = vmatpush.msrb.mxu1 %v1376_v28  ;;  %353 = vmatpush.msrb.mxu2 %v1362_v26 }
  0x37   :  { %242 = vmatpush.msrb.mxu0 %v1406_v33  ;;  %373 = vmatpush.msrb.mxu3 %v1387_v30 }
  0x38   :  { %262 = vmatpush.msrb.mxu1 %v1395_v31  ;;  %354 = vmatpush.msrb.mxu2 %v1381_v29 }
  0x39   :  { %243 = vmatpush.msrb.mxu0 %v1425_v36  ;;  %374 = vmatpush.msrb.mxu3 %v1406_v33 }
  0x3a   :  { %263 = vmatpush.msrb.mxu1 %v1414_v34  ;;  %355 = vmatpush.msrb.mxu2 %v1400_v32 }
  0x3b   :  { %244 = vmatpush.msrb.mxu0 %v1444_v39  ;;  %375 = vmatpush.msrb.mxu3 %v1425_v36 }
  0x3c   :  { %264 = vmatpush.msrb.mxu1 %v1433_v37  ;;  %356 = vmatpush.msrb.mxu2 %v1419_v35 }
  0x3d   :  { %245 = vmatpush.msrb.mxu0 %v1463_v42  ;;  %376 = vmatpush.msrb.mxu3 %v1444_v39 }
  0x3e   :  { %265 = vmatpush.msrb.mxu1 %v1452_v40  ;;  %357 = vmatpush.msrb.mxu2 %v1438_v38 }
  0x3f   :  { %246 = vmatpush.msrb.mxu0 %v1482_v45  ;;  %377 = vmatpush.msrb.mxu3 %v1463_v42 }
  0x40   :  { %266 = vmatpush.msrb.mxu1 %v1471_v43  ;;  %358 = vmatpush.msrb.mxu2 %v1457_v41 }
  0x41   :  { %247 = vmatpush.msrb.mxu0 %v1501_v48  ;;  %378 = vmatpush.msrb.mxu3 %v1482_v45 }
  0x42   :  { %267 = vmatpush.msrb.mxu1 %v1495_v47  ;;  %359 = vmatpush.msrb.mxu2 %v1476_v44 }
  0x43   :  { %384 = vmatpush.msra.mxu0 %v1214_v2  ;;  %379 = vmatpush.msrb.mxu3 %v1501_v48 }
  0x44   :  { %476 = vmatpush.msra.mxu1 %v1203_v0  ;;  %496 = vmatpush.msra.mxu2 %v1226_v4 }
  0x45   :  { %385 = vmatpush.msra.mxu0 %v1231_v5 }
  0x46   :  { %477 = vmatpush.msra.mxu1 %v1208_v1  ;;  %497 = vmatpush.msra.mxu2 %v1238_v6 }
  0x47   :  { %386 = vmatpush.msra.mxu0 %v1243_v7 }
  0x48   :  { %478 = vmatpush.msra.mxu1 %v1220_v3  ;;  %498 = vmatpush.msra.mxu2 %v1254_v9 }
  0x49   :  { %387 = vmatpush.msra.mxu0 %v1262_v10 }
  0x4a   :  { %479 = vmatpush.msra.mxu1 %v1248_v8  ;;  %499 = vmatpush.msra.mxu2 %v1273_v12 }
  0x4b   :  { %388 = vmatpush.msra.mxu0 %v1281_v13 }
  0x4c   :  { %480 = vmatpush.msra.mxu1 %v1267_v11  ;;  %500 = vmatpush.msra.mxu2 %v1292_v15  ;;  %v32_v11 = vld [vmem:[%s2202_s0 + $0x10] sm:$0xff] }
  0x4d   :  { %389 = vmatpush.msra.mxu0 %v1300_v16 }
  0x4e   :  { %481 = vmatpush.msra.mxu1 %v1286_v14  ;;  %501 = vmatpush.msra.mxu2 %v1311_v18 }
  0x4f   :  { %390 = vmatpush.msra.mxu0 %v1319_v19 }
  0x50   :  { %482 = vmatpush.msra.mxu1 %v1305_v17  ;;  %502 = vmatpush.msra.mxu2 %v1330_v21 }
  0x51   :  { %391 = vmatpush.msra.mxu0 %v1338_v22 }
  0x52   :  { %483 = vmatpush.msra.mxu1 %v1324_v20  ;;  %503 = vmatpush.msra.mxu2 %v1349_v24 }
  0x53   :  { %392 = vmatpush.msra.mxu0 %v1357_v25 }
  0x54   :  { %484 = vmatpush.msra.mxu1 %v1343_v23  ;;  %504 = vmatpush.msra.mxu2 %v1368_v27 }
  0x55   :  { %393 = vmatpush.msra.mxu0 %v1376_v28 }
  0x56   :  { %485 = vmatpush.msra.mxu1 %v1362_v26  ;;  %505 = vmatpush.msra.mxu2 %v1387_v30 }
  0x57   :  { %394 = vmatpush.msra.mxu0 %v1395_v31 }
  0x58   :  { %486 = vmatpush.msra.mxu1 %v1381_v29  ;;  %506 = vmatpush.msra.mxu2 %v1406_v33 }
  0x59   :  { %395 = vmatpush.msra.mxu0 %v1414_v34 }
  0x5a   :  { %487 = vmatpush.msra.mxu1 %v1400_v32  ;;  %507 = vmatpush.msra.mxu2 %v1425_v36 }
  0x5b   :  { %396 = vmatpush.msra.mxu0 %v1433_v37 }
  0x5c   :  { %488 = vmatpush.msra.mxu1 %v1419_v35  ;;  %508 = vmatpush.msra.mxu2 %v1444_v39 }
  0x5d   :  { %397 = vmatpush.msra.mxu0 %v1452_v40 }
  0x5e   :  { %489 = vmatpush.msra.mxu1 %v1438_v38  ;;  %509 = vmatpush.msra.mxu2 %v1463_v42 }
  0x5f   :  { %398 = vmatpush.msra.mxu0 %v1471_v43 }
  0x60   :  { %490 = vmatpush.msra.mxu1 %v1457_v41  ;;  %510 = vmatpush.msra.mxu2 %v1482_v45 }
  0x61   :  { %399 = vmatpush.msra.mxu0 %v1495_v47 }
  0x62   :  { %491 = vmatpush.msra.mxu1 %v1476_v44  ;;  %511 = vmatpush.msra.mxu2 %v1501_v48 }
  0x9e   :  { %v98_v50 = vpop.f32.mrf.mxu0 }
  0x9f   :  { %v141_v52 = vadd.f32 %v98_v50, %v30_v49 }
  0xa0   :  { %v118_v53 = vpop.f32.mrf.mxu1 }
  0xa1   :  { %v142_v54 = vmul.f32 0.5, %v141_v52  ;;  %v146_v55 = vadd.f32 %v118_v53, %v31_v51 }
  0xa3   :  { %1122 = vtanh.f32 %v142_v54  ;;  %v147_v56 = vmul.f32 0.5, %v146_v55 }
  0xa5   :  { %1124 = vtanh.f32 %v147_v56  ;;  %v138_v58 = vpop.f32.mrf.mxu2 }
  0xa6   :  { %v151_v61 = vadd.f32 %v1633_v57, %v138_v58 }
  0xa9   :  { %v1123_v59 = vpop.eup %1122 }
  0xaa   :  { %v144_v60 = vadd.f32 1.0, %v1123_v59  ;;  %v1730_v59 = vld [vmem:[%s2199_s2 + $0x120] sm:$0xff] }
  0xab   :  { %v1125_v62 = vpop.eup %1124 }
  0xac   :  { %v145_v63 = vmul.f32 0.5, %v144_v60  ;;  %v149_v8 = vadd.f32 1.0, %v1125_v62  ;;  %v1736_v60 = vld [vmem:[%s2199_s2 + $0x108] sm:$0xff]  ;;  %v1748_v62 = vld [vmem:[%s2199_s2 + $0xd8] sm:$0xff] }
  0xae   :  { %v152_v14 = vmul.f32 %v151_v61, %v145_v63  ;;  %v150_v20 = vmul.f32 0.5, %v149_v8  ;;  %v1742_v61 = vld [vmem:[%s2199_s2 + $0xf0] sm:$0xff]  ;;  %v1754_v63 = vld [vmem:[%s2199_s2 + $0xc0] sm:$0xff]  ;;  %v1760_v8 = vld [vmem:[%s2199_s2 + $0xa8] sm:$0xff] }
  0xb0   :  { %v153_v17 = vadd.f32 %v152_v14, %v32_v11  ;;  %v155_v23 = vsub.f32 1.0, %v150_v20  ;;  %v157_v29 = vmul.f32 %v150_v20, %v1489_v46  ;;  %v1766_v11 = vld [vmem:[%s2199_s2 + $0x90] sm:$0xff]  ;;  %v1772_v14 = vld [vmem:[%s2199_s2 + $0x78] sm:$0xff]  ;;  %v1784_v20 = vld [vmem:[%s2199_s2 + $0x48] sm:$0xff] }
  0xb2   :  { %1126 = vtanh.f32 %v153_v17  ;;  %v1778_v17 = vld [vmem:[%s2199_s2 + $0x60] sm:$0xff] }
  0xb8   :  { %v1127_v26 = vpop.eup %1126 }
  0xb9   :  { %v156_v32 = vmul.f32 %v1127_v26, %v155_v23  ;;  %v1790_v23 = vld [vmem:[%s2199_s2 + $0x30] sm:$0xff]  ;;  %v1796_v26 = vld [vmem:[%s2199_s2 + $0x18] sm:$0xff] }
  0xbb   :  { %v1640_v35 = vadd.f32 %v157_v29, %v156_v32  ;;  %v1801_v29 = vld [vmem:[%s2199_s2] sm:$0xff]  ;;  %v1101_v32 = vld [vmem:[%s2202_s0 + $0x48] sm:$0xff] }
  0xbd   :  { %159 = vst [vmem:[%s2203_s4] sm:$0xff] %v1640_v35  ;;  %228 = vmatmul.f32.vlgmr.msra.gmra.mxu3 %v1640_v35  ;;  %248 = vmatmul.f32.vlgmr.msrb.gmra.mxu0 %v1640_v35 }
  0xbe   :  { %268 = vmatmul.f32.vlgmr.msrb.gmra.mxu1 %v1640_v35  ;;  %516 = vmatpush.msra.mxu3 %v1214_v2 }
  0xbf   :  { %608 = vmatpush.msrb.mxu0 %v1203_v0  ;;  %628 = vmatpush.msrb.mxu1 %v1226_v4  ;;  %v1094_v0 = vld [vmem:[%s2202_s0 + $0x20] sm:$0xff] }
  0xc0   :  { %517 = vmatpush.msra.mxu3 %v1231_v5 }
  0xc1   :  { %609 = vmatpush.msrb.mxu0 %v1208_v1  ;;  %629 = vmatpush.msrb.mxu1 %v1238_v6 }
  0xc2   :  { %518 = vmatpush.msra.mxu3 %v1243_v7 }
  0xc3   :  { %610 = vmatpush.msrb.mxu0 %v1220_v3  ;;  %630 = vmatpush.msrb.mxu1 %v1254_v9  ;;  %v1093_v3 = vld [vmem:[%s2202_s0 + $0x18] sm:$0xff] }
  0xc4   :  { %519 = vmatpush.msra.mxu3 %v1262_v10 }
  0xc5   :  { %631 = vmatpush.msrb.mxu1 %v1273_v12  ;;  %611 = vmatpush.msrb.mxu0 %v1730_v59 }
  0xc6   :  { %520 = vmatpush.msra.mxu3 %v1281_v13 }
  0xc7   :  { %632 = vmatpush.msrb.mxu1 %v1292_v15  ;;  %612 = vmatpush.msrb.mxu0 %v1736_v60 }
  0xc8   :  { %521 = vmatpush.msra.mxu3 %v1300_v16 }
  0xc9   :  { %633 = vmatpush.msrb.mxu1 %v1311_v18  ;;  %613 = vmatpush.msrb.mxu0 %v1742_v61 }
  0xca   :  { %522 = vmatpush.msra.mxu3 %v1319_v19 }
  0xcb   :  { %634 = vmatpush.msrb.mxu1 %v1330_v21  ;;  %614 = vmatpush.msrb.mxu0 %v1748_v62 }
  0xcc   :  { %523 = vmatpush.msra.mxu3 %v1338_v22 }
  0xcd   :  { %635 = vmatpush.msrb.mxu1 %v1349_v24  ;;  %615 = vmatpush.msrb.mxu0 %v1754_v63 }
  0xce   :  { %524 = vmatpush.msra.mxu3 %v1357_v25 }
  0xcf   :  { %636 = vmatpush.msrb.mxu1 %v1368_v27  ;;  %616 = vmatpush.msrb.mxu0 %v1760_v8 }
  0xd0   :  { %525 = vmatpush.msra.mxu3 %v1376_v28 }
  0xd1   :  { %637 = vmatpush.msrb.mxu1 %v1387_v30  ;;  %617 = vmatpush.msrb.mxu0 %v1766_v11 }
  0xd2   :  { %526 = vmatpush.msra.mxu3 %v1395_v31 }
  0xd3   :  { %638 = vmatpush.msrb.mxu1 %v1406_v33  ;;  %618 = vmatpush.msrb.mxu0 %v1772_v14 }
  0xd4   :  { %527 = vmatpush.msra.mxu3 %v1414_v34 }
  0xd5   :  { %639 = vmatpush.msrb.mxu1 %v1425_v36  ;;  %v1095_v36 = vld [vmem:[%s2202_s0 + $0x28] sm:$0xff]  ;;  %619 = vmatpush.msrb.mxu0 %v1778_v17 }
  0xd6   :  { %528 = vmatpush.msra.mxu3 %v1433_v37 }
  0xd7   :  { %640 = vmatpush.msrb.mxu1 %v1444_v39  ;;  %620 = vmatpush.msrb.mxu0 %v1784_v20 }
  0xd8   :  { %529 = vmatpush.msra.mxu3 %v1452_v40 }
  0xd9   :  { %641 = vmatpush.msrb.mxu1 %v1463_v42  ;;  %621 = vmatpush.msrb.mxu0 %v1790_v23 }
  0xda   :  { %530 = vmatpush.msra.mxu3 %v1471_v43 }
  0xdb   :  { %642 = vmatpush.msrb.mxu1 %v1482_v45  ;;  %622 = vmatpush.msrb.mxu0 %v1796_v26 }
  0xdc   :  { %531 = vmatpush.msra.mxu3 %v1495_v47 }
  0xdd   :  { %643 = vmatpush.msrb.mxu1 %v1501_v48  ;;  %623 = vmatpush.msrb.mxu0 %v1801_v29 }
 0x13a   :  { %v249_v1 = vpop.f32.mrf.mxu0 }
 0x13b   :  { %v277_v4 = vadd.f32 %v1094_v0, %v249_v1  ;;  %v269_v21 = vpop.f32.mrf.mxu1 }
 0x13c   :  { %v282_v30 = vadd.f32 %v1633_v57, %v269_v21 }
 0x13d   :  { %v278_v15 = vmul.f32 0.5, %v277_v4 }
 0x140   :  { %v229_v6 = vpop.f32.mrf.mxu3 }
 0x141   :  { %v272_v9 = vadd.f32 %v1093_v3, %v229_v6  ;;  %v1102_v3 = vld [vmem:[%s2202_s0 + $0x50] sm:$0xff] }
 0x143   :  { %v273_v12 = vmul.f32 0.5, %v272_v9 }
 0x145   :  { %1128 = vtanh.f32 %v273_v12 }
 0x146   :  { %1130 = vtanh.f32 %v278_v15 }
 0x14b   :  { %v1129_v18 = vpop.eup %1128 }
 0x14c   :  { %v275_v24 = vadd.f32 1.0, %v1129_v18  ;;  %v1131_v27 = vpop.eup %1130 }
 0x14d   :  { %v280_v39 = vadd.f32 1.0, %v1131_v27  ;;  %v1103_v27 = vld [vmem:[%s2202_s0 + $0x58] sm:$0xff] }
 0x14e   :  { %v276_v33 = vmul.f32 0.5, %v275_v24 }
 0x14f   :  { %v281_v42 = vmul.f32 0.5, %v280_v39 }
 0x150   :  { %v283_v38 = vmul.f32 %v282_v30, %v276_v33 }
 0x151   :  { %v286_v44 = vsub.f32 1.0, %v281_v42  ;;  %v288_v46 = vmul.f32 %v281_v42, %v1640_v35 }
 0x152   :  { %v284_v41 = vadd.f32 %v1095_v36, %v283_v38 }
 0x154   :  { %1132 = vtanh.f32 %v284_v41 }
 0x15a   :  { %v1133_v45 = vpop.eup %1132 }
 0x15b   :  { %v287_v48 = vmul.f32 %v1133_v45, %v286_v44 }
 0x15d   :  { %v289_v49 = vadd.f32 %v288_v46, %v287_v48  ;;  %v1827_v48 = vld [vmem:[%s2199_s2 + $0x168] sm:$0xff] }
 0x15f   :  { %1096 = vst [vmem:[%s2203_s4 + $0x8] sm:$0xff] %v289_v49  ;;  %360 = vmatmul.f32.vlgmr.msrb.gmra.mxu2 %v289_v49  ;;  %380 = vmatmul.f32.vlgmr.msrb.gmra.mxu3 %v289_v49 }
 0x160   :  { %400 = vmatmul.f32.vlgmr.msra.gmra.mxu0 %v289_v49  ;;  %648 = vmatpush.msrb.mxu2 %v1214_v2  ;;  %v1097_v2 = vld [vmem:[%s2202_s0 + $0x30] sm:$0xff] }
 0x161   :  { %740 = vmatpush.msrb.mxu3 %v1827_v48 }
 0x162   :  { %649 = vmatpush.msrb.mxu2 %v1231_v5  ;;  %v1098_v5 = vld [vmem:[%s2202_s0 + $0x38] sm:$0xff] }
 0x164   :  { %650 = vmatpush.msrb.mxu2 %v1243_v7 }
 0x166   :  { %651 = vmatpush.msrb.mxu2 %v1262_v10 }
 0x168   :  { %652 = vmatpush.msrb.mxu2 %v1281_v13 }
 0x16a   :  { %653 = vmatpush.msrb.mxu2 %v1300_v16 }
 0x16c   :  { %654 = vmatpush.msrb.mxu2 %v1319_v19 }
 0x16e   :  { %655 = vmatpush.msrb.mxu2 %v1338_v22 }
 0x170   :  { %656 = vmatpush.msrb.mxu2 %v1357_v25 }
 0x172   :  { %657 = vmatpush.msrb.mxu2 %v1376_v28 }
 0x174   :  { %658 = vmatpush.msrb.mxu2 %v1395_v31 }
 0x176   :  { %659 = vmatpush.msrb.mxu2 %v1414_v34 }
 0x178   :  { %660 = vmatpush.msrb.mxu2 %v1433_v37 }
 0x17a   :  { %661 = vmatpush.msrb.mxu2 %v1452_v40 }
 0x17c   :  { %662 = vmatpush.msrb.mxu2 %v1471_v43  ;;  %v1099_v43 = vld [vmem:[%s2202_s0 + $0x40] sm:$0xff] }
 0x17e   :  { %663 = vmatpush.msrb.mxu2 %v1495_v47 }
 0x1dd   :  { %v401_v28 = vpop.f32.mrf.mxu0 }
 0x1de   :  { %v414_v37 = vadd.f32 %v1633_v57, %v401_v28  ;;  %v1897_v28 = vld [vmem:[%s2199_s2 + $0x110] sm:$0xff] }
 0x1e2   :  { %v361_v7 = vpop.f32.mrf.mxu2  ;;  %v381_v10 = vpop.f32.mrf.mxu3 }
 0x1e3   :  { %v404_v13 = vadd.f32 %v1097_v2, %v361_v7  ;;  %v409_v16 = vadd.f32 %v1098_v5, %v381_v10  ;;  %v1837_v2 = vld [vmem:[%s2199_s2 + $0x178] sm:$0xff]  ;;  %v1845_v5 = vld [vmem:[%s2199_s2 + $0x150] sm:$0xff]  ;;  %v1855_v10 = vld [vmem:[%s2199_s2 + $0x160] sm:$0xff] }
 0x1e4   :  { %v1850_v7 = vld [vmem:[%s2199_s2 + $0x158] sm:$0xff]  ;;  %741 = vmatpush.msrb.mxu3 %v1845_v5 }
 0x1e5   :  { %v405_v19 = vmul.f32 0.5, %v404_v13  ;;  %v410_v22 = vmul.f32 0.5, %v409_v16  ;;  %v1864_v13 = vld [vmem:[%s2199_s2 + $0x138] sm:$0xff]  ;;  %v1869_v16 = vld [vmem:[%s2199_s2 + $0x140] sm:$0xff] }
 0x1e6   :  { %742 = vmatpush.msrb.mxu3 %v1864_v13 }
 0x1e7   :  { %1134 = vtanh.f32 %v405_v19  ;;  %v1874_v19 = vld [vmem:[%s2199_s2 + $0x148] sm:$0xff] }
 0x1e8   :  { %1136 = vtanh.f32 %v410_v22  ;;  %v1883_v22 = vld [vmem:[%s2199_s2 + $0x128] sm:$0xff]  ;;  %743 = vmatpush.msrb.mxu3 %v1730_v59 }
 0x1ea   :  { %744 = vmatpush.msrb.mxu3 %v1736_v60 }
 0x1ec   :  { %745 = vmatpush.msrb.mxu3 %v1742_v61 }
 0x1ed   :  { %v1135_v25 = vpop.eup %1134 }
 0x1ee   :  { %v407_v31 = vadd.f32 1.0, %v1135_v25  ;;  %v1137_v34 = vpop.eup %1136  ;;  %v1888_v25 = vld [vmem:[%s2199_s2 + $0x130] sm:$0xff]  ;;  %746 = vmatpush.msrb.mxu3 %v1748_v62 }
 0x1ef   :  { %v412_v50 = vadd.f32 1.0, %v1137_v34  ;;  %v1911_v34 = vld [vmem:[%s2199_s2 + $0xf8] sm:$0xff] }
 0x1f0   :  { %v408_v40 = vmul.f32 0.5, %v407_v31  ;;  %v1902_v31 = vld [vmem:[%s2199_s2 + $0x118] sm:$0xff]  ;;  %747 = vmatpush.msrb.mxu3 %v1754_v63 }
 0x1f1   :  { %v413_v52 = vmul.f32 0.5, %v412_v50  ;;  %v1944_v50 = vld [vmem:[%s2199_s2 + $0xd0] sm:$0xff] }
 0x1f2   :  { %v415_v47 = vmul.f32 %v414_v37, %v408_v40  ;;  %v1916_v37 = vld [vmem:[%s2199_s2 + $0x100] sm:$0xff]  ;;  %748 = vmatpush.msrb.mxu3 %v1760_v8 }
 0x1f3   :  { %v418_v53 = vsub.f32 1.0, %v413_v52  ;;  %v420_v56 = vmul.f32 %v413_v52, %v289_v49  ;;  %v1832_v49 = vld [vmem:[%s2199_s2 + $0x170] sm:$0xff]  ;;  %v1925_v40 = vld [vmem:[%s2199_s2 + $0xe0] sm:$0xff]  ;;  %v1958_v52 = vld [vmem:[%s2199_s2 + $0xb8] sm:$0xff] }
 0x1f4   :  { %v416_v51 = vadd.f32 %v1099_v43, %v415_v47  ;;  %760 = vmatpush.msra.mxu0 %v1832_v49  ;;  %v1930_v43 = vld [vmem:[%s2199_s2 + $0xe8] sm:$0xff]  ;;  %749 = vmatpush.msrb.mxu3 %v1766_v11 }
 0x1f5   :  { %v1939_v47 = vld [vmem:[%s2199_s2 + $0xc8] sm:$0xff] }
 0x1f6   :  { %1138 = vtanh.f32 %v416_v51  ;;  %761 = vmatpush.msra.mxu0 %v1850_v7  ;;  %v1953_v51 = vld [vmem:[%s2199_s2 + $0xb0] sm:$0xff]  ;;  %750 = vmatpush.msrb.mxu3 %v1772_v14 }
 0x1f8   :  { %762 = vmatpush.msra.mxu0 %v1869_v16  ;;  %751 = vmatpush.msrb.mxu3 %v1778_v17 }
 0x1fa   :  { %763 = vmatpush.msra.mxu0 %v1883_v22  ;;  %752 = vmatpush.msrb.mxu3 %v1784_v20 }
 0x1fc   :  { %v1139_v54 = vpop.eup %1138  ;;  %764 = vmatpush.msra.mxu0 %v1897_v28  ;;  %753 = vmatpush.msrb.mxu3 %v1790_v23 }
 0x1fd   :  { %v419_v55 = vmul.f32 %v1139_v54, %v418_v53  ;;  %v1967_v53 = vld [vmem:[%s2199_s2 + $0x98] sm:$0xff]  ;;  %v1972_v54 = vld [vmem:[%s2199_s2 + $0xa0] sm:$0xff] }
 0x1fe   :  { %765 = vmatpush.msra.mxu0 %v1911_v34  ;;  %754 = vmatpush.msrb.mxu3 %v1796_v26 }
 0x1ff   :  { %v421_v58 = vadd.f32 %v420_v56, %v419_v55  ;;  %v1981_v55 = vld [vmem:[%s2199_s2 + $0x80] sm:$0xff]  ;;  %v1986_v56 = vld [vmem:[%s2199_s2 + $0x88] sm:$0xff] }
 0x200   :  { %766 = vmatpush.msra.mxu0 %v1925_v40  ;;  %755 = vmatpush.msrb.mxu3 %v1801_v29 }
 0x201   :  { %1100 = vst [vmem:[%s2203_s4 + $0x10] sm:$0xff] %v421_v58  ;;  %492 = vmatmul.f32.vlgmr.msra.gmra.mxu1 %v421_v58  ;;  %512 = vmatmul.f32.vlgmr.msra.gmra.mxu2 %v421_v58 }
 0x202   :  { %532 = vmatmul.f32.vlgmr.msra.gmra.mxu3 %v421_v58  ;;  %780 = vmatpush.msra.mxu1 %v1837_v2 }
 0x203   :  { %872 = vmatpush.msra.mxu2 %v1827_v48  ;;  %767 = vmatpush.msra.mxu0 %v1939_v47 }
 0x204   :  { %781 = vmatpush.msra.mxu1 %v1855_v10  ;;  %892 = vmatpush.msra.mxu3 %v1832_v49 }
 0x205   :  { %873 = vmatpush.msra.mxu2 %v1845_v5  ;;  %768 = vmatpush.msra.mxu0 %v1953_v51 }
 0x206   :  { %782 = vmatpush.msra.mxu1 %v1874_v19  ;;  %893 = vmatpush.msra.mxu3 %v1850_v7 }
 0x207   :  { %874 = vmatpush.msra.mxu2 %v1864_v13  ;;  %769 = vmatpush.msra.mxu0 %v1967_v53 }
 0x208   :  { %783 = vmatpush.msra.mxu1 %v1888_v25  ;;  %894 = vmatpush.msra.mxu3 %v1869_v16 }
 0x209   :  { %875 = vmatpush.msra.mxu2 %v1730_v59  ;;  %770 = vmatpush.msra.mxu0 %v1981_v55 }
 0x20a   :  { %784 = vmatpush.msra.mxu1 %v1902_v31  ;;  %895 = vmatpush.msra.mxu3 %v1883_v22 }
 0x20b   :  { %876 = vmatpush.msra.mxu2 %v1736_v60 }
 0x20c   :  { %785 = vmatpush.msra.mxu1 %v1916_v37  ;;  %896 = vmatpush.msra.mxu3 %v1897_v28 }
 0x20d   :  { %877 = vmatpush.msra.mxu2 %v1742_v61 }
 0x20e   :  { %786 = vmatpush.msra.mxu1 %v1930_v43  ;;  %897 = vmatpush.msra.mxu3 %v1911_v34 }
 0x20f   :  { %878 = vmatpush.msra.mxu2 %v1748_v62 }
 0x210   :  { %787 = vmatpush.msra.mxu1 %v1944_v50  ;;  %898 = vmatpush.msra.mxu3 %v1925_v40 }
 0x211   :  { %879 = vmatpush.msra.mxu2 %v1754_v63 }
 0x212   :  { %788 = vmatpush.msra.mxu1 %v1958_v52  ;;  %899 = vmatpush.msra.mxu3 %v1939_v47 }
 0x213   :  { %880 = vmatpush.msra.mxu2 %v1760_v8 }
 0x214   :  { %789 = vmatpush.msra.mxu1 %v1972_v54  ;;  %900 = vmatpush.msra.mxu3 %v1953_v51 }
 0x215   :  { %881 = vmatpush.msra.mxu2 %v1766_v11 }
 0x216   :  { %790 = vmatpush.msra.mxu1 %v1986_v56  ;;  %901 = vmatpush.msra.mxu3 %v1967_v53 }
 0x217   :  { %882 = vmatpush.msra.mxu2 %v1772_v14 }
 0x218   :  { %902 = vmatpush.msra.mxu3 %v1981_v55 }
 0x219   :  { %883 = vmatpush.msra.mxu2 %v1778_v17 }
 0x21b   :  { %884 = vmatpush.msra.mxu2 %v1784_v20 }
 0x21d   :  { %885 = vmatpush.msra.mxu2 %v1790_v23 }
 0x21f   :  { %886 = vmatpush.msra.mxu2 %v1796_v26 }
 0x221   :  { %887 = vmatpush.msra.mxu2 %v1801_v29 }
 0x27e   :  { %v493_v35 = vpop.f32.mrf.mxu1 }
 0x27f   :  { %v536_v0 = vadd.f32 %v1101_v32, %v493_v35  ;;  %v2000_v32 = vld [vmem:[%s2199_s2 + $0x70] sm:$0xff] }
 0x280   :  { %791 = vmatpush.msra.mxu1 %v2000_v32  ;;  %v2009_v35 = vld [vmem:[%s2199_s2 + $0x50] sm:$0xff] }
 0x281   :  { %v537_v1 = vmul.f32 0.5, %v536_v0  ;;  %v2014_v0 = vld [vmem:[%s2199_s2 + $0x58] sm:$0xff] }
 0x282   :  { %792 = vmatpush.msra.mxu1 %v2014_v0 }
 0x283   :  { %1140 = vtanh.f32 %v537_v1  ;;  %v2023_v1 = vld [vmem:[%s2199_s2 + $0x38] sm:$0xff] }
 0x284   :  { %v513_v4 = vpop.f32.mrf.mxu2 }
 0x285   :  { %v541_v6 = vadd.f32 %v1102_v3, %v513_v4  ;;  %v533_v15 = vpop.f32.mrf.mxu3  ;;  %v2028_v3 = vld [vmem:[%s2199_s2 + $0x40] sm:$0xff] }
 0x286   :  { %v546_v24 = vadd.f32 %v1633_v57, %v533_v15  ;;  %v2036_v4 = vld [vmem:[%s2199_s2 + $0x20] sm:$0xff]  ;;  %793 = vmatpush.msra.mxu1 %v2028_v3 }
 0x287   :  { %v542_v9 = vmul.f32 0.5, %v541_v6  ;;  %v2041_v6 = vld [vmem:[%s2199_s2 + $0x28] sm:$0xff]  ;;  %v1105_v15 = vld [vmem:[%s2202_s0 + $0x60] sm:$0xff] }
 0x288   :  { %794 = vmatpush.msra.mxu1 %v2041_v6 }
 0x289   :  { %v1141_v12 = vpop.eup %1140  ;;  %1142 = vtanh.f32 %v542_v9  ;;  %v2047_v9 = vld [vmem:[%s2199_s2 + $0x8] sm:$0xff] }
 0x28a   :  { %v539_v18 = vadd.f32 1.0, %v1141_v12  ;;  %v2055_v12 = vld [vmem:[%s2199_s2 + $0x10] sm:$0xff] }
 0x28b   :  { %795 = vmatpush.msra.mxu1 %v2055_v12 }
 0x28c   :  { %v540_v21 = vmul.f32 0.5, %v539_v18  ;;  %v1106_v18 = vld [vmem:[%s2202_s0 + $0x68] sm:$0xff] }
 0x28e   :  { %v547_v30 = vmul.f32 %v546_v24, %v540_v21 }
 0x28f   :  { %v1143_v33 = vpop.eup %1142 }
 0x290   :  { %v544_v36 = vadd.f32 1.0, %v1143_v33  ;;  %v548_v38 = vadd.f32 %v1103_v27, %v547_v30 }
 0x292   :  { %1144 = vtanh.f32 %v548_v38  ;;  %v545_v39 = vmul.f32 0.5, %v544_v36 }
 0x294   :  { %v550_v41 = vsub.f32 1.0, %v545_v39  ;;  %v552_v44 = vmul.f32 %v545_v39, %v421_v58  ;;  %v1995_v58 = vld [vmem:[%s2199_s2 + $0x68] sm:$0xff] }
 0x295   :  { %771 = vmatpush.msra.mxu0 %v1995_v58  ;;  %903 = vmatpush.msra.mxu3 %v1995_v58 }
 0x297   :  { %772 = vmatpush.msra.mxu0 %v2009_v35  ;;  %904 = vmatpush.msra.mxu3 %v2009_v35 }
 0x298   :  { %v1145_v42 = vpop.eup %1144 }
 0x299   :  { %v551_v45 = vmul.f32 %v1145_v42, %v550_v41  ;;  %773 = vmatpush.msra.mxu0 %v2023_v1  ;;  %905 = vmatpush.msra.mxu3 %v2023_v1 }
 0x29b   :  { %v1815_v46 = vadd.f32 %v552_v44, %v551_v45  ;;  %774 = vmatpush.msra.mxu0 %v2036_v4  ;;  %906 = vmatpush.msra.mxu3 %v2036_v4 }
 0x29d   :  { %1104 = vst [vmem:[%s2203_s4 + $0x18] sm:$0xff] %v1815_v46  ;;  %624 = vmatmul.f32.vlgmr.msrb.gmra.mxu0 %v1815_v46  ;;  %644 = vmatmul.f32.vlgmr.msrb.gmra.mxu1 %v1815_v46 }
 0x29e   :  { %664 = vmatmul.f32.vlgmr.msrb.gmra.mxu2 %v1815_v46  ;;  %775 = vmatpush.msra.mxu0 %v2047_v9 }
 0x29f   :  { %1004 = vmatpush.msrb.mxu1 %v1827_v48  ;;  %1024 = vmatpush.msrb.mxu2 %v1832_v49 }
 0x2a0   :  { %912 = vmatpush.msrb.mxu0 %v1837_v2  ;;  %907 = vmatpush.msra.mxu3 %v2047_v9 }
 0x2a1   :  { %1005 = vmatpush.msrb.mxu1 %v1845_v5  ;;  %1025 = vmatpush.msrb.mxu2 %v1850_v7 }
 0x2a2   :  { %913 = vmatpush.msrb.mxu0 %v1855_v10 }
 0x2a3   :  { %1006 = vmatpush.msrb.mxu1 %v1864_v13  ;;  %1026 = vmatpush.msrb.mxu2 %v1869_v16 }
 0x2a4   :  { %914 = vmatpush.msrb.mxu0 %v1874_v19 }
 0x2a5   :  { %1007 = vmatpush.msrb.mxu1 %v1730_v59  ;;  %1027 = vmatpush.msrb.mxu2 %v1883_v22 }
 0x2a6   :  { %915 = vmatpush.msrb.mxu0 %v1888_v25 }
 0x2a7   :  { %1008 = vmatpush.msrb.mxu1 %v1736_v60  ;;  %1028 = vmatpush.msrb.mxu2 %v1897_v28  ;;  %v1107_v60 = vld [vmem:[%s2202_s0 + $0x70] sm:$0xff] }
 0x2a8   :  { %916 = vmatpush.msrb.mxu0 %v1902_v31 }
 0x2a9   :  { %1009 = vmatpush.msrb.mxu1 %v1742_v61  ;;  %1029 = vmatpush.msrb.mxu2 %v1911_v34 }
 0x2aa   :  { %917 = vmatpush.msrb.mxu0 %v1916_v37 }
 0x2ab   :  { %1010 = vmatpush.msrb.mxu1 %v1748_v62  ;;  %1030 = vmatpush.msrb.mxu2 %v1925_v40 }
 0x2ac   :  { %918 = vmatpush.msrb.mxu0 %v1930_v43 }
 0x2ad   :  { %1011 = vmatpush.msrb.mxu1 %v1754_v63  ;;  %1031 = vmatpush.msrb.mxu2 %v1939_v47 }
 0x2ae   :  { %919 = vmatpush.msrb.mxu0 %v1944_v50 }
 0x2af   :  { %1012 = vmatpush.msrb.mxu1 %v1760_v8  ;;  %1032 = vmatpush.msrb.mxu2 %v1953_v51 }
 0x2b0   :  { %920 = vmatpush.msrb.mxu0 %v1958_v52 }
 0x2b1   :  { %1013 = vmatpush.msrb.mxu1 %v1766_v11  ;;  %1033 = vmatpush.msrb.mxu2 %v1967_v53  ;;  %v1114_v53 = vld [vmem:[%s2202_s0 + $0x98] sm:$0xff] }
 0x2b2   :  { %921 = vmatpush.msrb.mxu0 %v1972_v54 }
 0x2b3   :  { %1014 = vmatpush.msrb.mxu1 %v1772_v14  ;;  %1034 = vmatpush.msrb.mxu2 %v1981_v55 }
 0x2b4   :  { %922 = vmatpush.msrb.mxu0 %v1986_v56 }
 0x2b5   :  { %1015 = vmatpush.msrb.mxu1 %v1778_v17  ;;  %1035 = vmatpush.msrb.mxu2 %v1995_v58 }
 0x2b6   :  { %923 = vmatpush.msrb.mxu0 %v2000_v32 }
 0x2b7   :  { %1016 = vmatpush.msrb.mxu1 %v1784_v20  ;;  %1036 = vmatpush.msrb.mxu2 %v2009_v35  ;;  %v1110_v20 = vld [vmem:[%s2202_s0 + $0x80] sm:$0xff] }
 0x2b8   :  { %924 = vmatpush.msrb.mxu0 %v2014_v0 }
 0x2b9   :  { %1017 = vmatpush.msrb.mxu1 %v1790_v23  ;;  %1037 = vmatpush.msrb.mxu2 %v2023_v1 }
 0x2ba   :  { %925 = vmatpush.msrb.mxu0 %v2028_v3 }
 0x2bb   :  { %1018 = vmatpush.msrb.mxu1 %v1796_v26  ;;  %1038 = vmatpush.msrb.mxu2 %v2036_v4  ;;  %v1109_v26 = vld [vmem:[%s2202_s0 + $0x78] sm:$0xff] }
 0x2bc   :  { %926 = vmatpush.msrb.mxu0 %v2041_v6 }
 0x2bd   :  { %1019 = vmatpush.msrb.mxu1 %v1801_v29  ;;  %1039 = vmatpush.msrb.mxu2 %v2047_v9 }
 0x2be   :  { %927 = vmatpush.msrb.mxu0 %v2055_v12 }
 0x31a   :  { %v625_v21 = vpop.f32.mrf.mxu0  ;;  %v645_v24 = vpop.f32.mrf.mxu1 }
 0x31b   :  { %v668_v27 = vadd.f32 %v1105_v15, %v625_v21  ;;  %v673_v30 = vadd.f32 %v1106_v18, %v645_v24 }
 0x31d   :  { %v669_v33 = vmul.f32 0.5, %v668_v27  ;;  %v674_v36 = vmul.f32 0.5, %v673_v30 }
 0x31f   :  { %1146 = vtanh.f32 %v669_v33 }
 0x320   :  { %1148 = vtanh.f32 %v674_v36 }
 0x321   :  { %v665_v39 = vpop.f32.mrf.mxu2 }
 0x322   :  { %v678_v44 = vadd.f32 %v1633_v57, %v665_v39  ;;  %v1117_v39 = vld [vmem:[%s2202_s0 + $0xa8] sm:$0xff] }
 0x325   :  { %v1147_v38 = vpop.eup %1146 }
 0x326   :  { %v671_v41 = vadd.f32 1.0, %v1147_v38  ;;  %v1149_v59 = vpop.eup %1148 }
 0x327   :  { %v676_v45 = vadd.f32 1.0, %v1149_v59 }
 0x328   :  { %v672_v42 = vmul.f32 0.5, %v671_v41 }
 0x329   :  { %v677_v62 = vmul.f32 0.5, %v676_v45 }
 0x32a   :  { %v679_v61 = vmul.f32 %v678_v44, %v672_v42  ;;  %v1118_v44 = vld [vmem:[%s2202_s0 + $0xb0] sm:$0xff] }
 0x32b   :  { %v682_v63 = vsub.f32 1.0, %v677_v62  ;;  %v684_v11 = vmul.f32 %v677_v62, %v1815_v46 }
 0x32c   :  { %v680_v48 = vadd.f32 %v1107_v60, %v679_v61 }
 0x32e   :  { %1150 = vtanh.f32 %v680_v48 }
 0x334   :  { %v1151_v8 = vpop.eup %1150 }
 0x335   :  { %v683_v14 = vmul.f32 %v1151_v8, %v682_v63 }
 0x337   :  { %v685_v17 = vadd.f32 %v684_v11, %v683_v14  ;;  %v1119_v14 = vld [vmem:[%s2202_s0 + $0xb8] sm:$0xff] }
 0x339   :  { %1108 = vst [vmem:[%s2203_s4 + $0x20] sm:$0xff] %v685_v17  ;;  %756 = vmatmul.f32.vlgmr.msrb.gmra.mxu3 %v685_v17  ;;  %776 = vmatmul.f32.vlgmr.msra.gmra.mxu0 %v685_v17 }
 0x33a   :  { %796 = vmatmul.f32.vlgmr.msra.gmra.mxu1 %v685_v17  ;;  %1044 = vmatpush.msrb.mxu3 %v1837_v2 }
 0x33c   :  { %1045 = vmatpush.msrb.mxu3 %v1855_v10 }
 0x33e   :  { %1046 = vmatpush.msrb.mxu3 %v1874_v19 }
 0x340   :  { %1047 = vmatpush.msrb.mxu3 %v1888_v25  ;;  %v1111_v25 = vld [vmem:[%s2202_s0 + $0x88] sm:$0xff] }
 0x342   :  { %1048 = vmatpush.msrb.mxu3 %v1902_v31 }
 0x344   :  { %1049 = vmatpush.msrb.mxu3 %v1916_v37 }
 0x346   :  { %1050 = vmatpush.msrb.mxu3 %v1930_v43 }
 0x348   :  { %1051 = vmatpush.msrb.mxu3 %v1944_v50 }
 0x34a   :  { %1052 = vmatpush.msrb.mxu3 %v1958_v52  ;;  %v1113_v52 = vld [vmem:[%s2202_s0 + $0x90] sm:$0xff] }
 0x34c   :  { %1053 = vmatpush.msrb.mxu3 %v1972_v54 }
 0x34e   :  { %1054 = vmatpush.msrb.mxu3 %v1986_v56 }
 0x350   :  { %1055 = vmatpush.msrb.mxu3 %v2000_v32 }
 0x352   :  { %1056 = vmatpush.msrb.mxu3 %v2014_v0 }
 0x354   :  { %1057 = vmatpush.msrb.mxu3 %v2028_v3 }
 0x356   :  { %1058 = vmatpush.msrb.mxu3 %v2041_v6 }
 0x358   :  { %1059 = vmatpush.msrb.mxu3 %v2055_v12  ;;  %v1115_v12 = vld [vmem:[%s2202_s0 + $0xa0] sm:$0xff] }
 0x3b6   :  { %v777_v23 = vpop.f32.mrf.mxu0 }
 0x3b7   :  { %v805_v29 = vadd.f32 %v1110_v20, %v777_v23  ;;  %v797_v10 = vpop.f32.mrf.mxu1 }
 0x3b8   :  { %v810_v19 = vadd.f32 %v1633_v57, %v797_v10 }
 0x3b9   :  { %v806_v5 = vmul.f32 0.5, %v805_v29 }
 0x3bc   :  { %v757_v46 = vpop.f32.mrf.mxu3 }
 0x3bd   :  { %v800_v49 = vadd.f32 %v1109_v26, %v757_v46 }
 0x3bf   :  { %v801_v2 = vmul.f32 0.5, %v800_v49 }
 0x3c1   :  { %1152 = vtanh.f32 %v801_v2 }
 0x3c2   :  { %1154 = vtanh.f32 %v806_v5 }
 0x3c7   :  { %v1153_v7 = vpop.eup %1152 }
 0x3c8   :  { %v803_v13 = vadd.f32 1.0, %v1153_v7  ;;  %v1155_v16 = vpop.eup %1154 }
 0x3c9   :  { %v808_v31 = vadd.f32 1.0, %v1155_v16 }
 0x3ca   :  { %v804_v22 = vmul.f32 0.5, %v803_v13 }
 0x3cb   :  { %v809_v37 = vmul.f32 0.5, %v808_v31 }
 0x3cc   :  { %v811_v28 = vmul.f32 %v810_v19, %v804_v22 }
 0x3cd   :  { %v814_v40 = vsub.f32 1.0, %v809_v37  ;;  %v816_v47 = vmul.f32 %v809_v37, %v685_v17 }
 0x3ce   :  { %v812_v34 = vadd.f32 %v1111_v25, %v811_v28 }
 0x3d0   :  { %1156 = vtanh.f32 %v812_v34 }
 0x3d6   :  { %v1157_v43 = vpop.eup %1156 }
 0x3d7   :  { %v815_v50 = vmul.f32 %v1157_v43, %v814_v40 }
 0x3d9   :  { %v817_v51 = vadd.f32 %v816_v47, %v815_v50 }
 0x3db   :  { %1112 = vst [vmem:[%s2203_s4 + $0x28] sm:$0xff] %v817_v51  ;;  %888 = vmatmul.f32.vlgmr.msra.gmra.mxu2 %v817_v51  ;;  %908 = vmatmul.f32.vlgmr.msra.gmra.mxu3 %v817_v51 }
 0x3dc   :  { %928 = vmatmul.f32.vlgmr.msrb.gmra.mxu0 %v817_v51 }
 0x459   :  { %v929_v1 = vpop.f32.mrf.mxu0 }
 0x45a   :  { %v942_v6 = vadd.f32 %v1633_v57, %v929_v1 }
 0x45e   :  { %v889_v54 = vpop.f32.mrf.mxu2  ;;  %v909_v55 = vpop.f32.mrf.mxu3 }
 0x45f   :  { %v932_v56 = vadd.f32 %v1113_v52, %v889_v54  ;;  %v937_v58 = vadd.f32 %v1114_v53, %v909_v55 }
 0x461   :  { %v933_v32 = vmul.f32 0.5, %v932_v56  ;;  %v938_v35 = vmul.f32 0.5, %v937_v58 }
 0x463   :  { %1158 = vtanh.f32 %v933_v32 }
 0x464   :  { %1160 = vtanh.f32 %v938_v35 }
 0x469   :  { %v1159_v0 = vpop.eup %1158 }
 0x46a   :  { %v935_v3 = vadd.f32 1.0, %v1159_v0  ;;  %v1161_v4 = vpop.eup %1160 }
 0x46b   :  { %v940_v18 = vadd.f32 1.0, %v1161_v4 }
 0x46c   :  { %v936_v9 = vmul.f32 0.5, %v935_v3 }
 0x46d   :  { %v941_v24 = vmul.f32 0.5, %v940_v18 }
 0x46e   :  { %v943_v15 = vmul.f32 %v942_v6, %v936_v9 }
 0x46f   :  { %v946_v27 = vsub.f32 1.0, %v941_v24  ;;  %v948_v36 = vmul.f32 %v941_v24, %v817_v51 }
 0x470   :  { %v944_v21 = vadd.f32 %v1115_v12, %v943_v15 }
 0x472   :  { %1162 = vtanh.f32 %v944_v21 }
 0x478   :  { %v1163_v30 = vpop.eup %1162 }
 0x479   :  { %v947_v33 = vmul.f32 %v1163_v30, %v946_v27 }
 0x47b   :  { %v949_v38 = vadd.f32 %v948_v36, %v947_v33 }
 0x47d   :  { %1116 = vst [vmem:[%s2203_s4 + $0x30] sm:$0xff] %v949_v38  ;;  %1020 = vmatmul.f32.vlgmr.msrb.gmra.mxu1 %v949_v38  ;;  %1040 = vmatmul.f32.vlgmr.msrb.gmra.mxu2 %v949_v38 }
 0x47e   :  { %1060 = vmatmul.f32.vlgmr.msrb.gmra.mxu3 %v949_v38 }
 0x4fa   :  { %v1021_v41 = vpop.f32.mrf.mxu1 }
 0x4fb   :  { %v1064_v59 = vadd.f32 %v1117_v39, %v1021_v41 }
 0x4fd   :  { %v1065_v42 = vmul.f32 0.5, %v1064_v59 }
 0x4ff   :  { %1164 = vtanh.f32 %v1065_v42 }
 0x500   :  { %v1041_v60 = vpop.f32.mrf.mxu2 }
 0x501   :  { %v1069_v61 = vadd.f32 %v1118_v44, %v1041_v60  ;;  %v1061_v62 = vpop.f32.mrf.mxu3 }
 0x502   :  { %v1074_v11 = vadd.f32 %v1633_v57, %v1061_v62 }
 0x503   :  { %v1070_v45 = vmul.f32 0.5, %v1069_v61 }
 0x505   :  { %v1165_v48 = vpop.eup %1164  ;;  %1166 = vtanh.f32 %v1070_v45 }
 0x506   :  { %v1067_v63 = vadd.f32 1.0, %v1165_v48 }
 0x508   :  { %v1068_v8 = vmul.f32 0.5, %v1067_v63 }
 0x50a   :  { %v1075_v17 = vmul.f32 %v1074_v11, %v1068_v8 }
 0x50b   :  { %v1167_v20 = vpop.eup %1166 }
 0x50c   :  { %v1072_v23 = vadd.f32 1.0, %v1167_v20  ;;  %v1076_v26 = vadd.f32 %v1119_v14, %v1075_v17 }
 0x50e   :  { %1168 = vtanh.f32 %v1076_v26  ;;  %v1073_v29 = vmul.f32 0.5, %v1072_v23 }
 0x510   :  { %v1078_v46 = vsub.f32 1.0, %v1073_v29  ;;  %v1080_v2 = vmul.f32 %v1073_v29, %v949_v38 }
 0x514   :  { %v1169_v49 = vpop.eup %1168 }
 0x515   :  { %v1079_v5 = vmul.f32 %v1169_v49, %v1078_v46 }
 0x517   :  { %v1081_v7 = vadd.f32 %v1080_v2, %v1079_v5 }
 0x519   :  { %1120 = vst [vmem:[%s2203_s4 + $0x38] sm:$0xff] %v1081_v7 }
 0x51a   :  { %1084 = vst [vmem:[%s2204_s5] sm:$0xff] %v1081_v7 }

</bundles_post_ra>
